<compile_context>
chip_gen: v7x
topology: tpu7x:2x2x1
jax: 0.10.0
libtpu: 0.0.40
codegen_flags: <defaults>
</compile_context>

<pallas_src>
import functools

import jax
import jax.numpy as jnp
from jax.experimental import pallas as pl
from jax.experimental.pallas import tpu as pltpu


# ----------------------------------------------------------------------------
# VMEM budget / tiling helpers (generation-aware)
# ----------------------------------------------------------------------------
def _round_up(x, m):
    return ((x + m - 1) // m) * m


def _vmem_limit_bytes():
    cap = 64 * 1024 * 1024
    try:
        info = pltpu.get_tpu_info()
        cap = int(getattr(info, "vmem_capacity_bytes", cap))
    except Exception:
        pass
    # v5e/v6e (128 MiB) -> 112 MiB ; v7x (64 MiB) -> 48 MiB ; unknown -> 48 MiB
    return max(32 * 1024 * 1024, min(cap - 16 * 1024 * 1024, 112 * 1024 * 1024))


_VMEM_LIMIT = _vmem_limit_bytes()


def _divisor_tile(n, max_t):
    for t in (1024, 512, 256, 128, 64, 32, 16, 8):
        if t <= max_t and n % t == 0:
            return t
    return n  # TODO(synk): pad N (with node masking) when N is not a multiple of 8


def _proj_tile_m(n, f, hp, vmem_limit):
    budget = int(vmem_limit * 0.7)
    fixed = 2 * f * hp * 2                       # W (bf16, double-buffered)
    per_row = 2 * (2 * f * 2) + 2 * (2 * hp * 2)  # seq1/seq2 tiles + out tile (bf16, 2 bufs)
    max_t = max((budget - fixed) // max(per_row, 1), 8)
    return _divisor_tile(n, max_t)


def _gcn_tile_m(n, h2, n_br, vmem_limit):
    budget = int(vmem_limit * 0.7)
    fixed = n_br * (2 * n * h2 * 2 + 2 * h2 * 4)   # resident SW blocks (bf16) + biases
    per_row = 2 * n * 2 + n_br * 2 * h2 * 4        # adj tile (bf16, 2 bufs) + xm12 out (f32, 2 bufs)
    max_t = max((budget - fixed) // max(per_row, 1), 8)
    return _divisor_tile(n, max_t)


def _disc_tile_m(n, hp, vmem_limit):
    budget = int(vmem_limit * 0.6)
    fixed = 2 * hp * 2 * hp * 2 + 2 * 2 * hp * 4   # Wcat (bf16, 2 bufs) + node-mean ctx
    per_row = 2 * (hp * 4 + 2 * hp * 2) + 6 * 2 * hp * 4  # xm/x12 tiles + z/c temporaries
    max_t = max((budget - fixed) // max(per_row, 1), 8)
    return _divisor_tile(n, max_t)


# ----------------------------------------------------------------------------
# Kernel 1: row-tiled projection  SW_p = [seq1 @ W_p | seq2 @ W_p]   (lane concat)
#   grid = (Pw, N//TM);  W is resident per view (constant over the row axis).
# ----------------------------------------------------------------------------
def _proj_kernel(s1_ref, s2_ref, w_ref, out_ref, *, hp):
    w = w_ref[...]                                               # (F, Hp) bf16
    z1 = jnp.dot(s1_ref[...], w, preferred_element_type=jnp.float32)
    z2 = jnp.dot(s2_ref[...], w, preferred_element_type=jnp.float32)
    out_ref[:, :hp] = z1.astype(out_ref.dtype)                   # lane-aligned (Hp % 128 == 0)
    out_ref[:, hp:] = z2.astype(out_ref.dtype)


def project(seq1, seq2, w, tile_m, vmem_limit):
    """seq1/seq2 (N,F) bf16, w (Pw,F,Hp) bf16 -> (Pw, N, 2Hp) bf16."""
    pw, f, hp = w.shape
    n = seq1.shape[0]
    m = n // tile_m
    kernel = functools.partial(_proj_kernel, hp=hp)
    return pl.pallas_call(
        kernel,
        grid=(pw, m),
        in_specs=[
            pl.BlockSpec((tile_m, f), lambda p, i: (i, 0)),
            pl.BlockSpec((tile_m, f), lambda p, i: (i, 0)),
            pl.BlockSpec((None, f, hp), lambda p, i: (p, 0, 0)),   # resident per view
        ],
        out_specs=pl.BlockSpec((None, tile_m, 2 * hp), lambda p, i: (p, i, 0)),
        out_shape=jax.ShapeDtypeStruct((pw, n, 2 * hp), jnp.bfloat16),
        compiler_params=pltpu.CompilerParams(
            dimension_semantics=("parallel", "parallel"),
            vmem_limit_bytes=vmem_limit),
    )(seq1, seq2, w)


# ----------------------------------------------------------------------------
# Kernel 2: fused GCN aggregation for ALL HGCN branches in one adjacency pass.
#   grid = (P, N//TM)  (views outer, node tiles inner)
#   per step, for every branch br:  h12 = relu(adj_p[tile] @ SW12_br + bcat_br)
#   SW12 blocks have p-only (or constant) index maps -> VMEM-resident per view.
# ----------------------------------------------------------------------------
def _gcn_kernel(*refs, n_br):
    adj_ref = refs[0]
    sw_refs = refs[1:1 + n_br]
    b_refs = refs[1 + n_br:1 + 2 * n_br]
    out_refs = refs[1 + 2 * n_br:1 + 3 * n_br]
    adj = adj_ref[...]                                           # (TM, N) bf16
    for sw_ref, b_ref, o_ref in zip(sw_refs, b_refs, out_refs):
        h = jnp.dot(adj, sw_ref[...], preferred_element_type=jnp.float32) + b_ref[...]
        o_ref[...] = jnp.maximum(h, 0.0)                         # (TM, 2Hp) f32


def hgcn_aggregate(adjs, sw_list, b_list, tile_m, vmem_limit):
    """adjs (P,N,N) bf16, sw_list[i] (Pw_i,N,2Hp) bf16, b_list[i] (Pw_i,1,2Hp) f32
       -> list of xm12 (P, N, 2Hp) f32 (lanes [:Hp] = seq1 branch, [Hp:] = seq2)."""
    p_views, n, _ = adjs.shape
    n_br = len(sw_list)
    h2 = sw_list[0].shape[-1]
    m = n // tile_m

    in_specs = [pl.BlockSpec((None, tile_m, n), lambda p, i: (p, i, 0))]
    for sw in sw_list:
        if sw.shape[0] == 1:                                     # shared weights: one DMA total
            in_specs.append(pl.BlockSpec((None, n, h2), lambda p, i: (0, 0, 0)))
        else:                                                    # per-view: one DMA per view
            in_specs.append(pl.BlockSpec((None, n, h2), lambda p, i: (p, 0, 0)))
    for b in b_list:
        if b.shape[0] == 1:
            in_specs.append(pl.BlockSpec((None, 1, h2), lambda p, i: (0, 0, 0)))
        else:
            in_specs.append(pl.BlockSpec((None, 1, h2), lambda p, i: (p, 0, 0)))

    out_specs = [pl.BlockSpec((None, tile_m, h2), lambda p, i: (p, i, 0))
                 for _ in range(n_br)]
    out_shape = [jax.ShapeDtypeStruct((p_views, n, h2), jnp.float32)
                 for _ in range(n_br)]

    kernel = functools.partial(_gcn_kernel, n_br=n_br)
    outs = pl.pallas_call(
        kernel,
        grid=(p_views, m),
        in_specs=in_specs,
        out_specs=out_specs,
        out_shape=out_shape,
        compiler_params=pltpu.CompilerParams(
            dimension_semantics=("parallel", "parallel"),
            vmem_limit_bytes=vmem_limit),
    )(adjs, *sw_list, *b_list)
    if not isinstance(outs, (list, tuple)):
        outs = (outs,)
    return list(outs)


# ----------------------------------------------------------------------------
# Kernel 3: row-tiled discriminators for one branch.
#   grid = (P, N//TM); (1,1) loss outputs are resident accumulators over the
#   inner node-tile axis.  Scores:
#     Discriminator2 (per-node ctx c1 = sigmoid(xm_p)):   x W2 c1 + b2 (pos), x2 W2 c1 + b2 (neg)
#     Discriminator  (readout ctx c2 = sigmoid(mean_n xm_p)): x Wd c2 + bd / x2 Wd c2 + bd
#   BCEWithLogits with targets [1...1,0...0] -> softplus(-pos)/softplus(neg), mean over 2N.
# ----------------------------------------------------------------------------
def _disc_kernel(xm_ref, nm_ref, x12_ref, wcat_ref, bias_ref,
                 loss2_ref, lossd_ref, *, inv_2n, hp):
    p = pl.program_id(0)
    i = pl.program_id(1)

    @pl.when(i == 0)
    def _():
        loss2_ref[...] = jnp.zeros_like(loss2_ref)
        lossd_ref[...] = jnp.zeros_like(lossd_ref)

    x12 = x12_ref[...]                                           # (TM, 2Hp) bf16
    x = x12[:, :hp]
    x2 = x12[:, hp:]
    wcat = wcat_ref[...]                                         # (Hp, 2Hp) bf16
    z1 = jnp.dot(x, wcat, preferred_element_type=jnp.float32)    # [x@W2 | x@Wd]
    z2 = jnp.dot(x2, wcat, preferred_element_type=jnp.float32)   # [x2@W2 | x2@Wd]

    c1 = jax.nn.sigmoid(xm_ref[...])                             # (TM, Hp) per-node ctx
    c2 = jax.nn.sigmoid(nm_ref[...])                             # (1, Hp) readout ctx

    b2 = bias_ref[p, 0]
    bd = bias_ref[p, 1]

    sc_pos2 = jnp.sum(z1[:, :hp] * c1, axis=-1, keepdims=True) + b2
    sc_neg2 = jnp.sum(z2[:, :hp] * c1, axis=-1, keepdims=True) + b2
    sc_posd = jnp.sum(z1[:, hp:] * c2, axis=-1, keepdims=True) + bd
    sc_negd = jnp.sum(z2[:, hp:] * c2, axis=-1, keepdims=True) + bd

    def sp_sum(v):   # numerically-stable softplus, summed to (1, 1)
        return jnp.sum(jnp.maximum(v, 0.0) + jnp.log1p(jnp.exp(-jnp.abs(v))),
                       axis=(0, 1), keepdims=True)

    loss2_ref[...] += (sp_sum(-sc_pos2) + sp_sum(sc_neg2)) * inv_2n
    lossd_ref[...] += (sp_sum(-sc_posd) + sp_sum(sc_negd)) * inv_2n


def disc_apply(xm12, xmean, x12, wcat, bias, tile_m, vmem_limit):
    """xm12 (P,N,2Hp) f32, xmean (P,1,2Hp) f32, x12 (N,2Hp) bf16,
       wcat (P,Hp,2Hp) bf16, bias (P,2) f32 -> per-view losses (P,), (P,)."""
    p_views, n, h2 = xm12.shape
    hp = h2 // 2
    m = n // tile_m
    kernel = functools.partial(_disc_kernel, inv_2n=1.0 / (2.0 * n), hp=hp)
    loss2, lossd = pl.pallas_call(
        kernel,
        grid=(p_views, m),
        in_specs=[
            pl.BlockSpec((None, tile_m, hp), lambda p, i: (p, i, 0)),   # xm tile (seq1 lanes)
            pl.BlockSpec((None, 1, hp), lambda p, i: (p, 0, 0)),        # node-mean ctx (resident)
            pl.BlockSpec((tile_m, 2 * hp), lambda p, i: (i, 0)),        # view-mean [x | x2]
            pl.BlockSpec((None, hp, 2 * hp), lambda p, i: (p, 0, 0)),   # [W2 | Wd] (resident per p)
            pl.BlockSpec(memory_space=pltpu.MemorySpace.SMEM),          # biases (P, 2)
        ],
        out_specs=[
            pl.BlockSpec((None, 1, 1), lambda p, i: (p, 0, 0)),
            pl.BlockSpec((None, 1, 1), lambda p, i: (p, 0, 0)),
        ],
        out_shape=[jax.ShapeDtypeStruct((p_views, 1, 1), jnp.float32),
                   jax.ShapeDtypeStruct((p_views, 1, 1), jnp.float32)],
        compiler_params=pltpu.CompilerParams(
            dimension_semantics=("parallel", "arbitrary"),
            vmem_limit_bytes=vmem_limit),
    )(xm12, xmean, x12, wcat, bias)
    return loss2.reshape(p_views), lossd.reshape(p_views)


# ----------------------------------------------------------------------------
# HEMI forward (msk / samp_bias1 / samp_bias2 are None)
# ----------------------------------------------------------------------------
@functools.partial(jax.jit, static_argnames=("lam", "P", "hards"))
def hemi_forward(seq1, seq2, lbl, adjs, params, *, lam, P, hards=True):
    # `lbl` is accepted for API parity with the PyTorch module; the kernels assume
    # the standard DGI targets lbl = [ones(N); zeros(N)] and fold BCEWithLogits
    # into softplus terms (exactly equivalent for those targets).
    del lbl
    n, f = seq1.shape
    assert n % 8 == 0, "N must be a multiple of 8"  # TODO(synk): pad + mask nodes otherwise
    h = params["W2"].shape[-1]
    hp = _round_up(h, 128)
    ph = hp - h
    vmem_limit = _VMEM_LIMIT
    f32, bf16 = jnp.float32, jnp.bfloat16

    seq1b, seq2b = seq1.astype(bf16), seq2.astype(bf16)
    adjs_b = adjs.astype(bf16)      # no-op when the caller already stores adjs in bf16

    def pad_h(a):    # zero-pad last dim H -> Hp (exact: padded cols stay 0 through relu)
        return jnp.pad(a, [(0, 0)] * (a.ndim - 1) + [(0, ph)]) if ph else a

    def pad_hh(a):   # (P, H, H) -> (P, Hp, Hp)
        return jnp.pad(a, ((0, 0), (0, ph), (0, ph))) if ph else a

    # GCN branches: per-view (HGCN) and shared (HGCN_shared)
    branches = [(pad_h(params["W0"]).astype(bf16), pad_h(params["b0"]).astype(f32))]
    if hards:
        branches.append((pad_h(params["Ws"])[None].astype(bf16),
                         pad_h(params["bs"])[None].astype(f32)))

    # Discriminator bilinear weights [W2 | Wd] and biases
    wcat = jnp.concatenate([pad_hh(params["W2"]), pad_hh(params["Wd"])],
                           axis=-1).astype(bf16)                      # (P, Hp, 2Hp)
    bias = jnp.stack([params["b2"], params["bd"]], axis=-1).astype(f32)  # (P, 2)

    # 1) projections SW = [seq1 @ W | seq2 @ W]  (bf16, lane concat)
    tp = _proj_tile_m(n, f, hp, vmem_limit)
    sw_list, b_list = [], []
    for w, b in branches:
        sw_list.append(project(seq1b, seq2b, w, tp, vmem_limit))      # (Pw, N, 2Hp) bf16
        b_list.append(jnp.concatenate([b, b], axis=-1))               # (Pw, 1, 2Hp) f32

    # 2) fused GCN aggregation: one adjacency streaming pass for all branches
    tg = _gcn_tile_m(n, 2 * hp, len(sw_list), vmem_limit)
    xm12_list = hgcn_aggregate(adjs_b, sw_list, b_list, tg, vmem_limit)  # (P, N, 2Hp) f32 each

    # 3) per-branch discriminator losses
    td = _disc_tile_m(n, hp, vmem_limit)
    ret = jnp.float32(0.0)
    ret2 = jnp.float32(0.0)
    for xm12 in xm12_list:
        x12 = jnp.mean(xm12, axis=0).astype(bf16)                 # (N, 2Hp) view-mean [x | x2]
        xmean = jnp.mean(xm12, axis=1, keepdims=True)             # (P, 1, 2Hp) readout contexts
        l2, ld = disc_apply(xm12, xmean, x12, wcat, bias, td, vmem_limit)
        if lam != 0:
            ret = ret + jnp.sum(l2)
        if lam != 1:
            ret2 = ret2 + jnp.sum(ld)
    ret = ret * lam * (1.0 / P)
    ret2 = ret2 * (1.0 - lam) * (1.0 / P)

    # PyTorch returns xm of the LAST hgcn branch (shared branch when hards=True)
    xm = xm12_list[-1][:, :, :h]
    return ret + ret2, xm


# ----------------------------------------------------------------------------
# Deterministic parameter init + demo run
# ----------------------------------------------------------------------------
def init_params(key, nfeat, nhid, P):
    ks = jax.random.split(key, 4)
    s_in = 1.0 / jnp.sqrt(jnp.float32(nfeat))
    s_h = 1.0 / jnp.sqrt(jnp.float32(nhid))
    return {
        # HGCN (per-view GCN weights)
        "W0": jax.random.normal(ks[0], (P, nfeat, nhid), jnp.float32) * s_in,
        "b0": jnp.zeros((P, 1, nhid), jnp.float32),
        # HGCN_shared (shared GCN weights)
        "Ws": jax.random.normal(ks[1], (nfeat, nhid), jnp.float32) * s_in,
        "bs": jnp.zeros((1, nhid), jnp.float32),
        # Discriminator2 bilinear weights/biases (one per view)
        "W2": jax.random.normal(ks[2], (P, nhid, nhid), jnp.float32) * s_h,
        "b2": jnp.zeros((P,), jnp.float32),
        # Discriminator bilinear weights/biases (one per view)
        "Wd": jax.random.normal(ks[3], (P, nhid, nhid), jnp.float32) * s_h,
        "bd": jnp.zeros((P,), jnp.float32),
    }


if __name__ == "__main__":
    N, nfeat, nhid, P = 16, 32, 32, 3
    lam = 0.5

    key = jax.random.PRNGKey(0)
    k_seq, k_perm, k_adj, k_par = jax.random.split(key, 4)

    seq1 = jax.random.normal(k_seq, (N, nfeat), jnp.float32)
    perm = jax.random.permutation(k_perm, N)
    seq2 = seq1[perm]                                 # corrupted (shuffled rows)

    adj_raw = jax.random.uniform(k_adj, (P, N, N), jnp.float32)
    adjs = (adj_raw / jnp.sum(adj_raw, axis=-1, keepdims=True)).astype(jnp.bfloat16)

    lbl = jnp.concatenate(
        [jnp.ones((N, 1), jnp.float32), jnp.zeros((N, 1), jnp.float32)], axis=0)

    params = init_params(k_par, nfeat, nhid, P)

    loss, xm = hemi_forward(seq1, seq2, lbl, adjs, params,
                            lam=lam, P=P, hards=True)
    jax.block_until_ready((loss, xm))
    assert jnp.isfinite(loss)
    assert xm.shape == (P, N, nhid)
    print("KERNEL_OK")
</pallas_src>

<mosaic_0001>
module attributes {stable_mosaic.version = 11 : i64} {
  func.func @_proj_kernel(%arg0: i32, %arg1: i32, %arg2: memref<16x32xbf16, #tpu.memory_space<vmem>>, %arg3: memref<16x32xbf16, #tpu.memory_space<vmem>>, %arg4: memref<1x32x128xbf16, #tpu.memory_space<vmem>>, %arg5: memref<1x16x256xbf16, #tpu.memory_space<vmem>>) attributes {dimension_semantics = [#tpu.dimension_semantics<parallel>, #tpu.dimension_semantics<parallel>], iteration_bounds = array<i64: 3, 1>, scalar_prefetch = 0 : i64, scratch_operands = 0 : i64, tpu.core_type = #tpu.core_type<tc>, window_params = [{transform_indices = @transform_0, window_bounds = array<i64: 16, 32>}, {transform_indices = @transform_1, window_bounds = array<i64: 16, 32>}, {transform_indices = @transform_2, window_bounds = array<i64: 1, 32, 128>}, {transform_indices = @transform_3, window_bounds = array<i64: 1, 16, 256>}]} {
    %c0 = arith.constant 0 : index
    %c0_0 = arith.constant 0 : index
    %c0_1 = arith.constant 0 : index
    %0 = vector.load %arg4[%c0, %c0_0, %c0_1] : memref<1x32x128xbf16, #tpu.memory_space<vmem>>, vector<1x32x128xbf16>
    %1 = vector.shape_cast %0 : vector<1x32x128xbf16> to vector<32x128xbf16>
    %c0_2 = arith.constant 0 : index
    %c0_3 = arith.constant 0 : index
    %2 = vector.load %arg2[%c0_2, %c0_3] : memref<16x32xbf16, #tpu.memory_space<vmem>>, vector<16x32xbf16>
    %cst = arith.constant dense<0.000000e+00> : vector<16x128xf32>
    %3 = tpu.matmul %2, %1, %cst {dimension_numbers = #tpu.dot_dimension_numbers<[1], [0], [0], [1], [0, 0, 1, 1], [], []>} : vector<16x32xbf16>, vector<32x128xbf16>, vector<16x128xf32> -> vector<16x128xf32>
    %c0_4 = arith.constant 0 : index
    %c0_5 = arith.constant 0 : index
    %4 = vector.load %arg3[%c0_4, %c0_5] : memref<16x32xbf16, #tpu.memory_space<vmem>>, vector<16x32xbf16>
    %cst_6 = arith.constant dense<0.000000e+00> : vector<16x128xf32>
    %5 = tpu.matmul %4, %1, %cst_6 {dimension_numbers = #tpu.dot_dimension_numbers<[1], [0], [0], [1], [0, 0, 1, 1], [], []>} : vector<16x32xbf16>, vector<32x128xbf16>, vector<16x128xf32> -> vector<16x128xf32>
    %6 = arith.truncf %3 : vector<16x128xf32> to vector<16x128xbf16>
    %c0_7 = arith.constant 0 : index
    %c0_8 = arith.constant 0 : index
    %c0_9 = arith.constant 0 : index
    %7 = vector.load %arg5[%c0_7, %c0_8, %c0_9] : memref<1x16x256xbf16, #tpu.memory_space<vmem>>, vector<1x16x128xbf16>
    %8 = vector.shape_cast %7 : vector<1x16x128xbf16> to vector<16x128xbf16>
    %9 = vector.shape_cast %6 : vector<16x128xbf16> to vector<1x16x128xbf16>
    tpu.vector_store %arg5[%c0_7, %c0_8, %c0_9], %9 {strides = array<i32>} : memref<1x16x256xbf16, #tpu.memory_space<vmem>>, vector<1x16x128xbf16>,
    %10 = arith.truncf %5 : vector<16x128xf32> to vector<16x128xbf16>
    %c0_10 = arith.constant 0 : index
    %c0_11 = arith.constant 0 : index
    %c128 = arith.constant 128 : index
    %11 = vector.load %arg5[%c0_10, %c0_11, %c128] : memref<1x16x256xbf16, #tpu.memory_space<vmem>>, vector<1x16x128xbf16>
    %12 = vector.shape_cast %11 : vector<1x16x128xbf16> to vector<16x128xbf16>
    %13 = vector.shape_cast %10 : vector<16x128xbf16> to vector<1x16x128xbf16>
    tpu.vector_store %arg5[%c0_10, %c0_11, %c128], %13 {strides = array<i32>} : memref<1x16x256xbf16, #tpu.memory_space<vmem>>, vector<1x16x128xbf16>,
    return
  }
  func.func @transform_0(%arg0: i32, %arg1: i32) -> (i32, i32) {
    %c0_i32 = arith.constant 0 : i32
    %c0_i32_0 = arith.constant 0 : i32
    return %arg1, %c0_i32 : i32, i32
  }
  func.func @transform_1(%arg0: i32, %arg1: i32) -> (i32, i32) {
    %c0_i32 = arith.constant 0 : i32
    %c0_i32_0 = arith.constant 0 : i32
    return %arg1, %c0_i32 : i32, i32
  }
  func.func @transform_2(%arg0: i32, %arg1: i32) -> (i32, i32, i32) {
    %c0_i32 = arith.constant 0 : i32
    %c0_i32_0 = arith.constant 0 : i32
    %c0_i32_1 = arith.constant 0 : i32
    return %arg0, %c0_i32, %c0_i32_0 : i32, i32, i32
  }
  func.func @transform_3(%arg0: i32, %arg1: i32) -> (i32, i32, i32) {
    %c0_i32 = arith.constant 0 : i32
    %c0_i32_0 = arith.constant 0 : i32
    return %arg0, %arg1, %c0_i32 : i32, i32, i32
  }
}

module attributes {stable_mosaic.version = 11 : i64} {
  func.func @_proj_kernel(%arg0: i32, %arg1: i32, %arg2: memref<16x32xbf16, #tpu.memory_space<vmem>>, %arg3: memref<16x32xbf16, #tpu.memory_space<vmem>>, %arg4: memref<1x32x128xbf16, #tpu.memory_space<vmem>>, %arg5: memref<1x16x256xbf16, #tpu.memory_space<vmem>>) attributes {dimension_semantics = [#tpu.dimension_semantics<parallel>, #tpu.dimension_semantics<parallel>], iteration_bounds = array<i64: 1, 1>, scalar_prefetch = 0 : i64, scratch_operands = 0 : i64, tpu.core_type = #tpu.core_type<tc>, window_params = [{transform_indices = @transform_0, window_bounds = array<i64: 16, 32>}, {transform_indices = @transform_1, window_bounds = array<i64: 16, 32>}, {transform_indices = @transform_2, window_bounds = array<i64: 1, 32, 128>}, {transform_indices = @transform_3, window_bounds = array<i64: 1, 16, 256>}]} {
    %c0 = arith.constant 0 : index
    %c0_0 = arith.constant 0 : index
    %c0_1 = arith.constant 0 : index
    %0 = vector.load %arg4[%c0, %c0_0, %c0_1] : memref<1x32x128xbf16, #tpu.memory_space<vmem>>, vector<1x32x128xbf16>
    %1 = vector.shape_cast %0 : vector<1x32x128xbf16> to vector<32x128xbf16>
    %c0_2 = arith.constant 0 : index
    %c0_3 = arith.constant 0 : index
    %2 = vector.load %arg2[%c0_2, %c0_3] : memref<16x32xbf16, #tpu.memory_space<vmem>>, vector<16x32xbf16>
    %cst = arith.constant dense<0.000000e+00> : vector<16x128xf32>
    %3 = tpu.matmul %2, %1, %cst {dimension_numbers = #tpu.dot_dimension_numbers<[1], [0], [0], [1], [0, 0, 1, 1], [], []>} : vector<16x32xbf16>, vector<32x128xbf16>, vector<16x128xf32> -> vector<16x128xf32>
    %c0_4 = arith.constant 0 : index
    %c0_5 = arith.constant 0 : index
    %4 = vector.load %arg3[%c0_4, %c0_5] : memref<16x32xbf16, #tpu.memory_space<vmem>>, vector<16x32xbf16>
    %cst_6 = arith.constant dense<0.000000e+00> : vector<16x128xf32>
    %5 = tpu.matmul %4, %1, %cst_6 {dimension_numbers = #tpu.dot_dimension_numbers<[1], [0], [0], [1], [0, 0, 1, 1], [], []>} : vector<16x32xbf16>, vector<32x128xbf16>, vector<16x128xf32> -> vector<16x128xf32>
    %6 = arith.truncf %3 : vector<16x128xf32> to vector<16x128xbf16>
    %c0_7 = arith.constant 0 : index
    %c0_8 = arith.constant 0 : index
    %c0_9 = arith.constant 0 : index
    %7 = vector.load %arg5[%c0_7, %c0_8, %c0_9] : memref<1x16x256xbf16, #tpu.memory_space<vmem>>, vector<1x16x128xbf16>
    %8 = vector.shape_cast %7 : vector<1x16x128xbf16> to vector<16x128xbf16>
    %9 = vector.shape_cast %6 : vector<16x128xbf16> to vector<1x16x128xbf16>
    tpu.vector_store %arg5[%c0_7, %c0_8, %c0_9], %9 {strides = array<i32>} : memref<1x16x256xbf16, #tpu.memory_space<vmem>>, vector<1x16x128xbf16>,
    %10 = arith.truncf %5 : vector<16x128xf32> to vector<16x128xbf16>
    %c0_10 = arith.constant 0 : index
    %c0_11 = arith.constant 0 : index
    %c128 = arith.constant 128 : index
    %11 = vector.load %arg5[%c0_10, %c0_11, %c128] : memref<1x16x256xbf16, #tpu.memory_space<vmem>>, vector<1x16x128xbf16>
    %12 = vector.shape_cast %11 : vector<1x16x128xbf16> to vector<16x128xbf16>
    %13 = vector.shape_cast %10 : vector<16x128xbf16> to vector<1x16x128xbf16>
    tpu.vector_store %arg5[%c0_10, %c0_11, %c128], %13 {strides = array<i32>} : memref<1x16x256xbf16, #tpu.memory_space<vmem>>, vector<1x16x128xbf16>,
    return
  }
  func.func @transform_0(%arg0: i32, %arg1: i32) -> (i32, i32) {
    %c0_i32 = arith.constant 0 : i32
    %c0_i32_0 = arith.constant 0 : i32
    return %arg1, %c0_i32 : i32, i32
  }
  func.func @transform_1(%arg0: i32, %arg1: i32) -> (i32, i32) {
    %c0_i32 = arith.constant 0 : i32
    %c0_i32_0 = arith.constant 0 : i32
    return %arg1, %c0_i32 : i32, i32
  }
  func.func @transform_2(%arg0: i32, %arg1: i32) -> (i32, i32, i32) {
    %c0_i32 = arith.constant 0 : i32
    %c0_i32_0 = arith.constant 0 : i32
    %c0_i32_1 = arith.constant 0 : i32
    return %arg0, %c0_i32, %c0_i32_0 : i32, i32, i32
  }
  func.func @transform_3(%arg0: i32, %arg1: i32) -> (i32, i32, i32) {
    %c0_i32 = arith.constant 0 : i32
    %c0_i32_0 = arith.constant 0 : i32
    return %arg0, %arg1, %c0_i32 : i32, i32, i32
  }
}

module attributes {stable_mosaic.version = 11 : i64} {
  func.func @_gcn_kernel(%arg0: i32, %arg1: i32, %arg2: memref<1x16x16xbf16, #tpu.memory_space<vmem>>, %arg3: memref<1x16x256xbf16, #tpu.memory_space<vmem>>, %arg4: memref<1x16x256xbf16, #tpu.memory_space<vmem>>, %arg5: memref<1x1x256xf32, #tpu.memory_space<vmem>>, %arg6: memref<1x1x256xf32, #tpu.memory_space<vmem>>, %arg7: memref<1x16x256xf32, #tpu.memory_space<vmem>>, %arg8: memref<1x16x256xf32, #tpu.memory_space<vmem>>) attributes {dimension_semantics = [#tpu.dimension_semantics<parallel>, #tpu.dimension_semantics<parallel>], iteration_bounds = array<i64: 3, 1>, scalar_prefetch = 0 : i64, scratch_operands = 0 : i64, tpu.core_type = #tpu.core_type<tc>, window_params = [{transform_indices = @transform_0, window_bounds = array<i64: 1, 16, 16>}, {transform_indices = @transform_1, window_bounds = array<i64: 1, 16, 256>}, {pipeline_mode = #tpu.pipeline_mode<synchronous>, transform_indices = @transform_2, window_bounds = array<i64: 1, 16, 256>}, {transform_indices = @transform_3, window_bounds = array<i64: 1, 1, 256>}, {pipeline_mode = #tpu.pipeline_mode<synchronous>, transform_indices = @transform_4, window_bounds = array<i64: 1, 1, 256>}, {transform_indices = @transform_5, window_bounds = array<i64: 1, 16, 256>}, {transform_indices = @transform_6, window_bounds = array<i64: 1, 16, 256>}]} {
    %c0 = arith.constant 0 : index
    %c0_0 = arith.constant 0 : index
    %c0_1 = arith.constant 0 : index
    %0 = vector.load %arg2[%c0, %c0_0, %c0_1] : memref<1x16x16xbf16, #tpu.memory_space<vmem>>, vector<1x16x16xbf16>
    %1 = vector.shape_cast %0 : vector<1x16x16xbf16> to vector<16x16xbf16>
    %c0_2 = arith.constant 0 : index
    %c0_3 = arith.constant 0 : index
    %c0_4 = arith.constant 0 : index
    %2 = vector.load %arg3[%c0_2, %c0_3, %c0_4] : memref<1x16x256xbf16, #tpu.memory_space<vmem>>, vector<1x16x256xbf16>
    %3 = vector.shape_cast %2 : vector<1x16x256xbf16> to vector<16x256xbf16>
    %cst = arith.constant dense<0.000000e+00> : vector<16x256xf32>
    %4 = tpu.matmul %1, %3, %cst {dimension_numbers = #tpu.dot_dimension_numbers<[1], [0], [0], [1], [0, 0, 1, 1], [], []>} : vector<16x16xbf16>, vector<16x256xbf16>, vector<16x256xf32> -> vector<16x256xf32>
    %c0_5 = arith.constant 0 : index
    %c0_6 = arith.constant 0 : index
    %c0_7 = arith.constant 0 : index
    %5 = vector.load %arg5[%c0_5, %c0_6, %c0_7] : memref<1x1x256xf32, #tpu.memory_space<vmem>>, vector<1x1x256xf32>
    %6 = vector.shape_cast %5 : vector<1x1x256xf32> to vector<1x256xf32>
    %7 = vector.broadcast %6 : vector<1x256xf32> to vector<16x256xf32>
    %8 = arith.addf %4, %7 : vector<16x256xf32>
    %cst_8 = arith.constant 0.000000e+00 : f32
    %9 = vector.broadcast %cst_8 : f32 to vector<16x256xf32>
    %10 = arith.maximumf %8, %9 : vector<16x256xf32>
    %c0_9 = arith.constant 0 : index
    %c0_10 = arith.constant 0 : index
    %c0_11 = arith.constant 0 : index
    %11 = vector.load %arg7[%c0_9, %c0_10, %c0_11] : memref<1x16x256xf32, #tpu.memory_space<vmem>>, vector<1x16x256xf32>
    %12 = vector.shape_cast %11 : vector<1x16x256xf32> to vector<16x256xf32>
    %13 = vector.shape_cast %10 : vector<16x256xf32> to vector<1x16x256xf32>
    tpu.vector_store %arg7[%c0_9, %c0_10, %c0_11], %13 {strides = array<i32>} : memref<1x16x256xf32, #tpu.memory_space<vmem>>, vector<1x16x256xf32>,
    %c0_12 = arith.constant 0 : index
    %c0_13 = arith.constant 0 : index
    %c0_14 = arith.constant 0 : index
    %14 = vector.load %arg4[%c0_12, %c0_13, %c0_14] : memref<1x16x256xbf16, #tpu.memory_space<vmem>>, vector<1x16x256xbf16>
    %15 = vector.shape_cast %14 : vector<1x16x256xbf16> to vector<16x256xbf16>
    %cst_15 = arith.constant dense<0.000000e+00> : vector<16x256xf32>
    %16 = tpu.matmul %1, %15, %cst_15 {dimension_numbers = #tpu.dot_dimension_numbers<[1], [0], [0], [1], [0, 0, 1, 1], [], []>} : vector<16x16xbf16>, vector<16x256xbf16>, vector<16x256xf32> -> vector<16x256xf32>
    %c0_16 = arith.constant 0 : index
    %c0_17 = arith.constant 0 : index
    %c0_18 = arith.constant 0 : index
    %17 = vector.load %arg6[%c0_16, %c0_17, %c0_18] : memref<1x1x256xf32, #tpu.memory_space<vmem>>, vector<1x1x256xf32>
    %18 = vector.shape_cast %17 : vector<1x1x256xf32> to vector<1x256xf32>
    %19 = vector.broadcast %18 : vector<1x256xf32> to vector<16x256xf32>
    %20 = arith.addf %16, %19 : vector<16x256xf32>
    %cst_19 = arith.constant 0.000000e+00 : f32
    %21 = vector.broadcast %cst_19 : f32 to vector<16x256xf32>
    %22 = arith.maximumf %20, %21 : vector<16x256xf32>
    %c0_20 = arith.constant 0 : index
    %c0_21 = arith.constant 0 : index
    %c0_22 = arith.constant 0 : index
    %23 = vector.load %arg8[%c0_20, %c0_21, %c0_22] : memref<1x16x256xf32, #tpu.memory_space<vmem>>, vector<1x16x256xf32>
    %24 = vector.shape_cast %23 : vector<1x16x256xf32> to vector<16x256xf32>
    %25 = vector.shape_cast %22 : vector<16x256xf32> to vector<1x16x256xf32>
    tpu.vector_store %arg8[%c0_20, %c0_21, %c0_22], %25 {strides = array<i32>} : memref<1x16x256xf32, #tpu.memory_space<vmem>>, vector<1x16x256xf32>,
    return
  }
  func.func @transform_0(%arg0: i32, %arg1: i32) -> (i32, i32, i32) {
    %c0_i32 = arith.constant 0 : i32
    %c0_i32_0 = arith.constant 0 : i32
    return %arg0, %arg1, %c0_i32 : i32, i32, i32
  }
  func.func @transform_1(%arg0: i32, %arg1: i32) -> (i32, i32, i32) {
    %c0_i32 = arith.constant 0 : i32
    %c0_i32_0 = arith.constant 0 : i32
    %c0_i32_1 = arith.constant 0 : i32
    return %arg0, %c0_i32, %c0_i32_0 : i32, i32, i32
  }
  func.func @transform_2(%arg0: i32, %arg1: i32) -> (i32, i32, i32) {
    %c0_i32 = arith.constant 0 : i32
    %c0_i32_0 = arith.constant 0 : i32
    %c0_i32_1 = arith.constant 0 : i32
    %c0_i32_2 = arith.constant 0 : i32
    return %c0_i32, %c0_i32_0, %c0_i32_1 : i32, i32, i32
  }
  func.func @transform_3(%arg0: i32, %arg1: i32) -> (i32, i32, i32) {
    %c0_i32 = arith.constant 0 : i32
    %c0_i32_0 = arith.constant 0 : i32
    %c0_i32_1 = arith.constant 0 : i32
    return %arg0, %c0_i32, %c0_i32_0 : i32, i32, i32
  }
  func.func @transform_4(%arg0: i32, %arg1: i32) -> (i32, i32, i32) {
    %c0_i32 = arith.constant 0 : i32
    %c0_i32_0 = arith.constant 0 : i32
    %c0_i32_1 = arith.constant 0 : i32
    %c0_i32_2 = arith.constant 0 : i32
    return %c0_i32, %c0_i32_0, %c0_i32_1 : i32, i32, i32
  }
  func.func @transform_5(%arg0: i32, %arg1: i32) -> (i32, i32, i32) {
    %c0_i32 = arith.constant 0 : i32
    %c0_i32_0 = arith.constant 0 : i32
    return %arg0, %arg1, %c0_i32 : i32, i32, i32
  }
  func.func @transform_6(%arg0: i32, %arg1: i32) -> (i32, i32, i32) {
    %c0_i32 = arith.constant 0 : i32
    %c0_i32_0 = arith.constant 0 : i32
    return %arg0, %arg1, %c0_i32 : i32, i32, i32
  }
}

module attributes {stable_mosaic.version = 11 : i64} {
  func.func @_disc_kernel(%arg0: i32, %arg1: i32, %arg2: memref<1x16x128xf32, #tpu.memory_space<vmem>>, %arg3: memref<1x1x128xf32, #tpu.memory_space<vmem>>, %arg4: memref<16x256xbf16, #tpu.memory_space<vmem>>, %arg5: memref<1x128x256xbf16, #tpu.memory_space<vmem>>, %arg6: memref<3x2xf32, #tpu.memory_space<smem>>, %arg7: memref<1x1x1xf32, #tpu.memory_space<vmem>>, %arg8: memref<1x1x1xf32, #tpu.memory_space<vmem>>) attributes {dimension_semantics = [#tpu.dimension_semantics<parallel>, #tpu.dimension_semantics<arbitrary>], iteration_bounds = array<i64: 3, 1>, scalar_prefetch = 0 : i64, scratch_operands = 0 : i64, tpu.core_type = #tpu.core_type<tc>, window_params = [{transform_indices = @transform_0, window_bounds = array<i64: 1, 16, 128>}, {transform_indices = @transform_1, window_bounds = array<i64: 1, 1, 128>}, {transform_indices = @transform_2, window_bounds = array<i64: 16, 256>}, {transform_indices = @transform_3, window_bounds = array<i64: 1, 128, 256>}, {transform_indices = @transform_4, window_bounds = array<i64: 3, 2>}, {transform_indices = @transform_5, window_bounds = array<i64: 1, 1, 1>}, {transform_indices = @transform_6, window_bounds = array<i64: 1, 1, 1>}]} {
    %c0_i32 = arith.constant 0 : i32
    %0 = arith.cmpi eq, %arg1, %c0_i32 : i32
    %1 = arith.extui %0 : i1 to i32
    %c0_i32_0 = arith.constant 0 : i32
    %2 = arith.cmpi ne, %1, %c0_i32_0 : i32
    scf.if %2 {
      %cst_47 = arith.constant 0.000000e+00 : f32
      %128 = vector.broadcast %cst_47 : f32 to vector<1x1xf32>
      %c0_48 = arith.constant 0 : index
      %c0_49 = arith.constant 0 : index
      %c0_50 = arith.constant 0 : index
      %129 = vector.load %arg7[%c0_48, %c0_49, %c0_50] : memref<1x1x1xf32, #tpu.memory_space<vmem>>, vector<1x1x1xf32>
      %130 = vector.shape_cast %129 : vector<1x1x1xf32> to vector<1x1xf32>
      %131 = vector.shape_cast %128 : vector<1x1xf32> to vector<1x1x1xf32>
      tpu.vector_store %arg7[%c0_48, %c0_49, %c0_50], %131 {strides = array<i32>} : memref<1x1x1xf32, #tpu.memory_space<vmem>>, vector<1x1x1xf32>,
      %cst_51 = arith.constant 0.000000e+00 : f32
      %132 = vector.broadcast %cst_51 : f32 to vector<1x1xf32>
      %c0_52 = arith.constant 0 : index
      %c0_53 = arith.constant 0 : index
      %c0_54 = arith.constant 0 : index
      %133 = vector.load %arg8[%c0_52, %c0_53, %c0_54] : memref<1x1x1xf32, #tpu.memory_space<vmem>>, vector<1x1x1xf32>
      %134 = vector.shape_cast %133 : vector<1x1x1xf32> to vector<1x1xf32>
      %135 = vector.shape_cast %132 : vector<1x1xf32> to vector<1x1x1xf32>
      tpu.vector_store %arg8[%c0_52, %c0_53, %c0_54], %135 {strides = array<i32>} : memref<1x1x1xf32, #tpu.memory_space<vmem>>, vector<1x1x1xf32>,
    } else {
    }
    %c0 = arith.constant 0 : index
    %c0_1 = arith.constant 0 : index
    %3 = vector.load %arg4[%c0, %c0_1] : memref<16x256xbf16, #tpu.memory_space<vmem>>, vector<16x256xbf16>
    %4 = vector.extract_strided_slice %3 {offsets = [0, 0], sizes = [16, 128], strides = [1, 1]} : vector<16x256xbf16> to vector<16x128xbf16>
    %5 = vector.extract_strided_slice %3 {offsets = [0, 128], sizes = [16, 128], strides = [1, 1]} : vector<16x256xbf16> to vector<16x128xbf16>
    %c0_2 = arith.constant 0 : index
    %c0_3 = arith.constant 0 : index
    %c0_4 = arith.constant 0 : index
    %6 = vector.load %arg5[%c0_2, %c0_3, %c0_4] : memref<1x128x256xbf16, #tpu.memory_space<vmem>>, vector<1x128x256xbf16>
    %7 = vector.shape_cast %6 : vector<1x128x256xbf16> to vector<128x256xbf16>
    %cst = arith.constant dense<0.000000e+00> : vector<16x256xf32>
    %8 = tpu.matmul %4, %7, %cst {dimension_numbers = #tpu.dot_dimension_numbers<[1], [0], [0], [1], [0, 0, 1, 1], [], []>} : vector<16x128xbf16>, vector<128x256xbf16>, vector<16x256xf32> -> vector<16x256xf32>
    %cst_5 = arith.constant dense<0.000000e+00> : vector<16x256xf32>
    %9 = tpu.matmul %5, %7, %cst_5 {dimension_numbers = #tpu.dot_dimension_numbers<[1], [0], [0], [1], [0, 0, 1, 1], [], []>} : vector<16x128xbf16>, vector<128x256xbf16>, vector<16x256xf32> -> vector<16x256xf32>
    %c0_6 = arith.constant 0 : index
    %c0_7 = arith.constant 0 : index
    %c0_8 = arith.constant 0 : index
    %10 = vector.load %arg2[%c0_6, %c0_7, %c0_8] : memref<1x16x128xf32, #tpu.memory_space<vmem>>, vector<1x16x128xf32>
    %11 = vector.shape_cast %10 : vector<1x16x128xf32> to vector<16x128xf32>
    %12 = arith.negf %11 : vector<16x128xf32>
    %13 = math.exp %12 : vector<16x128xf32>
    %cst_9 = arith.constant 1.000000e+00 : f32
    %14 = vector.broadcast %cst_9 : f32 to vector<16x128xf32>
    %15 = arith.addf %14, %13 : vector<16x128xf32>
    %16 = arith.divf %14, %15 : vector<16x128xf32>
    %c0_10 = arith.constant 0 : index
    %c0_11 = arith.constant 0 : index
    %c0_12 = arith.constant 0 : index
    %17 = vector.load %arg3[%c0_10, %c0_11, %c0_12] : memref<1x1x128xf32, #tpu.memory_space<vmem>>, vector<1x1x128xf32>
    %18 = vector.shape_cast %17 : vector<1x1x128xf32> to vector<1x128xf32>
    %19 = arith.negf %18 : vector<1x128xf32>
    %20 = math.exp %19 : vector<1x128xf32>
    %cst_13 = arith.constant 1.000000e+00 : f32
    %21 = vector.broadcast %cst_13 : f32 to vector<1x128xf32>
    %22 = arith.addf %21, %20 : vector<1x128xf32>
    %23 = arith.divf %21, %22 : vector<1x128xf32>
    %24 = arith.index_cast %arg0 : i32 to index
    %c0_14 = arith.constant 0 : index
    %25 = memref.load %arg6[%24, %c0_14] : memref<3x2xf32, #tpu.memory_space<smem>>
    %26 = arith.index_cast %arg0 : i32 to index
    %c1 = arith.constant 1 : index
    %27 = memref.load %arg6[%26, %c1] : memref<3x2xf32, #tpu.memory_space<smem>>
    %28 = vector.extract_strided_slice %8 {offsets = [0, 0], sizes = [16, 128], strides = [1, 1]} : vector<16x256xf32> to vector<16x128xf32>
    %29 = arith.mulf %28, %16 : vector<16x128xf32>
    %cst_15 = arith.constant dense<0.000000e+00> : vector<16xf32>
    %30 = vector.multi_reduction <add>, %29, %cst_15 [1] : vector<16x128xf32> to vector<16xf32>
    %31 = vector.shape_cast %30 : vector<16xf32> to vector<16x1xf32>
    %32 = vector.broadcast %25 : f32 to vector<16x1xf32>
    %33 = arith.addf %31, %32 : vector<16x1xf32>
    %34 = vector.extract_strided_slice %9 {offsets = [0, 0], sizes = [16, 128], strides = [1, 1]} : vector<16x256xf32> to vector<16x128xf32>
    %35 = arith.mulf %34, %16 : vector<16x128xf32>
    %cst_16 = arith.constant dense<0.000000e+00> : vector<16xf32>
    %36 = vector.multi_reduction <add>, %35, %cst_16 [1] : vector<16x128xf32> to vector<16xf32>
    %37 = vector.shape_cast %36 : vector<16xf32> to vector<16x1xf32>
    %38 = vector.broadcast %25 : f32 to vector<16x1xf32>
    %39 = arith.addf %37, %38 : vector<16x1xf32>
    %40 = vector.extract_strided_slice %8 {offsets = [0, 128], sizes = [16, 128], strides = [1, 1]} : vector<16x256xf32> to vector<16x128xf32>
    %41 = vector.broadcast %23 : vector<1x128xf32> to vector<16x128xf32>
    %42 = arith.mulf %40, %41 : vector<16x128xf32>
    %cst_17 = arith.constant dense<0.000000e+00> : vector<16xf32>
    %43 = vector.multi_reduction <add>, %42, %cst_17 [1] : vector<16x128xf32> to vector<16xf32>
    %44 = vector.shape_cast %43 : vector<16xf32> to vector<16x1xf32>
    %45 = vector.broadcast %27 : f32 to vector<16x1xf32>
    %46 = arith.addf %44, %45 : vector<16x1xf32>
    %47 = vector.extract_strided_slice %9 {offsets = [0, 128], sizes = [16, 128], strides = [1, 1]} : vector<16x256xf32> to vector<16x128xf32>
    %48 = vector.broadcast %23 : vector<1x128xf32> to vector<16x128xf32>
    %49 = arith.mulf %47, %48 : vector<16x128xf32>
    %cst_18 = arith.constant dense<0.000000e+00> : vector<16xf32>
    %50 = vector.multi_reduction <add>, %49, %cst_18 [1] : vector<16x128xf32> to vector<16xf32>
    %51 = vector.shape_cast %50 : vector<16xf32> to vector<16x1xf32>
    %52 = vector.broadcast %27 : f32 to vector<16x1xf32>
    %53 = arith.addf %51, %52 : vector<16x1xf32>
    %c0_19 = arith.constant 0 : index
    %c0_20 = arith.constant 0 : index
    %c0_21 = arith.constant 0 : index
    %54 = vector.load %arg7[%c0_19, %c0_20, %c0_21] : memref<1x1x1xf32, #tpu.memory_space<vmem>>, vector<1x1x1xf32>
    %55 = vector.shape_cast %54 : vector<1x1x1xf32> to vector<1x1xf32>
    %cst_22 = arith.constant 0.000000e+00 : f32
    %56 = vector.broadcast %cst_22 : f32 to vector<16x1xf32>
    %57 = arith.subf %56, %33 : vector<16x1xf32>
    %cst_23 = arith.constant 0.000000e+00 : f32
    %58 = vector.broadcast %cst_23 : f32 to vector<16x1xf32>
    %59 = arith.maximumf %57, %58 : vector<16x1xf32>
    %60 = math.absf %57 : vector<16x1xf32>
    %cst_24 = arith.constant 0.000000e+00 : f32
    %61 = vector.broadcast %cst_24 : f32 to vector<16x1xf32>
    %62 = arith.subf %61, %60 : vector<16x1xf32>
    %63 = math.exp %62 : vector<16x1xf32>
    %64 = math.log1p %63 : vector<16x1xf32>
    %65 = arith.addf %59, %64 : vector<16x1xf32>
    %66 = vector.shape_cast %65 : vector<16x1xf32> to vector<1x16x1xf32>
    %cst_25 = arith.constant dense<0.000000e+00> : vector<1xf32>
    %67 = vector.multi_reduction <add>, %66, %cst_25 [1, 2] : vector<1x16x1xf32> to vector<1xf32>
    %68 = vector.shape_cast %67 : vector<1xf32> to vector<1x1x1xf32>
    %69 = vector.extract %68[0, 0, 0] : f32 from vector<1x1x1xf32>
    %70 = vector.broadcast %69 : f32 to vector<1x1xf32>
    %cst_26 = arith.constant 0.000000e+00 : f32
    %71 = vector.broadcast %cst_26 : f32 to vector<16x1xf32>
    %72 = arith.maximumf %39, %71 : vector<16x1xf32>
    %73 = math.absf %39 : vector<16x1xf32>
    %cst_27 = arith.constant 0.000000e+00 : f32
    %74 = vector.broadcast %cst_27 : f32 to vector<16x1xf32>
    %75 = arith.subf %74, %73 : vector<16x1xf32>
    %76 = math.exp %75 : vector<16x1xf32>
    %77 = math.log1p %76 : vector<16x1xf32>
    %78 = arith.addf %72, %77 : vector<16x1xf32>
    %79 = vector.shape_cast %78 : vector<16x1xf32> to vector<1x16x1xf32>
    %cst_28 = arith.constant dense<0.000000e+00> : vector<1xf32>
    %80 = vector.multi_reduction <add>, %79, %cst_28 [1, 2] : vector<1x16x1xf32> to vector<1xf32>
    %81 = vector.shape_cast %80 : vector<1xf32> to vector<1x1x1xf32>
    %82 = vector.extract %81[0, 0, 0] : f32 from vector<1x1x1xf32>
    %83 = vector.broadcast %82 : f32 to vector<1x1xf32>
    %84 = arith.addf %70, %83 : vector<1x1xf32>
    %cst_29 = arith.constant 3.125000e-02 : f32
    %85 = vector.broadcast %cst_29 : f32 to vector<1x1xf32>
    %86 = arith.mulf %84, %85 : vector<1x1xf32>
    %87 = arith.addf %55, %86 : vector<1x1xf32>
    %c0_30 = arith.constant 0 : index
    %c0_31 = arith.constant 0 : index
    %c0_32 = arith.constant 0 : index
    %88 = vector.load %arg7[%c0_30, %c0_31, %c0_32] : memref<1x1x1xf32, #tpu.memory_space<vmem>>, vector<1x1x1xf32>
    %89 = vector.shape_cast %88 : vector<1x1x1xf32> to vector<1x1xf32>
    %90 = vector.shape_cast %87 : vector<1x1xf32> to vector<1x1x1xf32>
    tpu.vector_store %arg7[%c0_30, %c0_31, %c0_32], %90 {strides = array<i32>} : memref<1x1x1xf32, #tpu.memory_space<vmem>>, vector<1x1x1xf32>,
    %c0_33 = arith.constant 0 : index
    %c0_34 = arith.constant 0 : index
    %c0_35 = arith.constant 0 : index
    %91 = vector.load %arg8[%c0_33, %c0_34, %c0_35] : memref<1x1x1xf32, #tpu.memory_space<vmem>>, vector<1x1x1xf32>
    %92 = vector.shape_cast %91 : vector<1x1x1xf32> to vector<1x1xf32>
    %cst_36 = arith.constant 0.000000e+00 : f32
    %93 = vector.broadcast %cst_36 : f32 to vector<16x1xf32>
    %94 = arith.subf %93, %46 : vector<16x1xf32>
    %cst_37 = arith.constant 0.000000e+00 : f32
    %95 = vector.broadcast %cst_37 : f32 to vector<16x1xf32>
    %96 = arith.maximumf %94, %95 : vector<16x1xf32>
    %97 = math.absf %94 : vector<16x1xf32>
    %cst_38 = arith.constant 0.000000e+00 : f32
    %98 = vector.broadcast %cst_38 : f32 to vector<16x1xf32>
    %99 = arith.subf %98, %97 : vector<16x1xf32>
    %100 = math.exp %99 : vector<16x1xf32>
    %101 = math.log1p %100 : vector<16x1xf32>
    %102 = arith.addf %96, %101 : vector<16x1xf32>
    %103 = vector.shape_cast %102 : vector<16x1xf32> to vector<1x16x1xf32>
    %cst_39 = arith.constant dense<0.000000e+00> : vector<1xf32>
    %104 = vector.multi_reduction <add>, %103, %cst_39 [1, 2] : vector<1x16x1xf32> to vector<1xf32>
    %105 = vector.shape_cast %104 : vector<1xf32> to vector<1x1x1xf32>
    %106 = vector.extract %105[0, 0, 0] : f32 from vector<1x1x1xf32>
    %107 = vector.broadcast %106 : f32 to vector<1x1xf32>
    %cst_40 = arith.constant 0.000000e+00 : f32
    %108 = vector.broadcast %cst_40 : f32 to vector<16x1xf32>
    %109 = arith.maximumf %53, %108 : vector<16x1xf32>
    %110 = math.absf %53 : vector<16x1xf32>
    %cst_41 = arith.constant 0.000000e+00 : f32
    %111 = vector.broadcast %cst_41 : f32 to vector<16x1xf32>
    %112 = arith.subf %111, %110 : vector<16x1xf32>
    %113 = math.exp %112 : vector<16x1xf32>
    %114 = math.log1p %113 : vector<16x1xf32>
    %115 = arith.addf %109, %114 : vector<16x1xf32>
    %116 = vector.shape_cast %115 : vector<16x1xf32> to vector<1x16x1xf32>
    %cst_42 = arith.constant dense<0.000000e+00> : vector<1xf32>
    %117 = vector.multi_reduction <add>, %116, %cst_42 [1, 2] : vector<1x16x1xf32> to vector<1xf32>
    %118 = vector.shape_cast %117 : vector<1xf32> to vector<1x1x1xf32>
    %119 = vector.extract %118[0, 0, 0] : f32 from vector<1x1x1xf32>
    %120 = vector.broadcast %119 : f32 to vector<1x1xf32>
    %121 = arith.addf %107, %120 : vector<1x1xf32>
    %cst_43 = arith.constant 3.125000e-02 : f32
    %122 = vector.broadcast %cst_43 : f32 to vector<1x1xf32>
    %123 = arith.mulf %121, %122 : vector<1x1xf32>
    %124 = arith.addf %92, %123 : vector<1x1xf32>
    %c0_44 = arith.constant 0 : index
    %c0_45 = arith.constant 0 : index
    %c0_46 = arith.constant 0 : index
    %125 = vector.load %arg8[%c0_44, %c0_45, %c0_46] : memref<1x1x1xf32, #tpu.memory_space<vmem>>, vector<1x1x1xf32>
    %126 = vector.shape_cast %125 : vector<1x1x1xf32> to vector<1x1xf32>
    %127 = vector.shape_cast %124 : vector<1x1xf32> to vector<1x1x1xf32>
    tpu.vector_store %arg8[%c0_44, %c0_45, %c0_46], %127 {strides = array<i32>} : memref<1x1x1xf32, #tpu.memory_space<vmem>>, vector<1x1x1xf32>,
    return
  }
  func.func @transform_0(%arg0: i32, %arg1: i32) -> (i32, i32, i32) {
    %c0_i32 = arith.constant 0 : i32
    %c0_i32_0 = arith.constant 0 : i32
    return %arg0, %arg1, %c0_i32 : i32, i32, i32
  }
  func.func @transform_1(%arg0: i32, %arg1: i32) -> (i32, i32, i32) {
    %c0_i32 = arith.constant 0 : i32
    %c0_i32_0 = arith.constant 0 : i32
    %c0_i32_1 = arith.constant 0 : i32
    return %arg0, %c0_i32, %c0_i32_0 : i32, i32, i32
  }
  func.func @transform_2(%arg0: i32, %arg1: i32) -> (i32, i32) {
    %c0_i32 = arith.constant 0 : i32
    %c0_i32_0 = arith.constant 0 : i32
    return %arg1, %c0_i32 : i32, i32
  }
  func.func @transform_3(%arg0: i32, %arg1: i32) -> (i32, i32, i32) {
    %c0_i32 = arith.constant 0 : i32
    %c0_i32_0 = arith.constant 0 : i32
    %c0_i32_1 = arith.constant 0 : i32
    return %arg0, %c0_i32, %c0_i32_0 : i32, i32, i32
  }
  func.func @transform_4(%arg0: i32, %arg1: i32) -> (i32, i32) {
    %c0_i32 = arith.constant 0 : i32
    %c0_i32_0 = arith.constant 0 : i32
    %c0_i32_1 = arith.constant 0 : i32
    return %c0_i32, %c0_i32_0 : i32, i32
  }
  func.func @transform_5(%arg0: i32, %arg1: i32) -> (i32, i32, i32) {
    %c0_i32 = arith.constant 0 : i32
    %c0_i32_0 = arith.constant 0 : i32
    %c0_i32_1 = arith.constant 0 : i32
    return %arg0, %c0_i32, %c0_i32_0 : i32, i32, i32
  }
  func.func @transform_6(%arg0: i32, %arg1: i32) -> (i32, i32, i32) {
    %c0_i32 = arith.constant 0 : i32
    %c0_i32_0 = arith.constant 0 : i32
    %c0_i32_1 = arith.constant 0 : i32
    return %arg0, %c0_i32, %c0_i32_0 : i32, i32, i32
  }
}

</mosaic_0001>

<bundles_post_ra>
// kernel: hemi_forward.5
= control target key start
LH: loop header
LB: loop body
LE: loop exit
PB: predicated region body
PF: predicated region fallthrough
CT: control target
= control target key end

     0   :  { %s635_s12 = smov 0   ;;  %s637_s13 = smov 0   ;;  %s674_s0 = inlined_call_operand.vmem [shape: bf16[16,32], index: 0, kind: input, shape index: {}]   ;;  %s675_s1 = inlined_call_operand.vmem [shape: bf16[16,32], index: 1, kind: input, shape index: {}]   ;;  %s676_s2 = inlined_call_operand.vmem [shape: bf16[3,32,128], index: 2, kind: input, shape index: {}]   ;;  %s677_s3 = inlined_call_operand.vmem [shape: bf16[3,16,256], index: 3, kind: output, shape index: {}]  }
   0x1   :  { %s639_s14 = smov 0  }
   0x2 LB: > { %s25_s15 = sadd.s32 1, %s607_s13  ;;  %p503_p0 = scmp.ge.s32.totalorder %s611_s14, 1  ;;  %s611_s14 = sphi %s639_s14, %s13_s14   ;;  %s607_s13 = sphi %s637_s13, %s679_s13   ;;  %s603_s12 = sphi %s635_s12, %s678_s12  }
   0x3   : > { %p27_p1 = scmp.ge.s32.totalorder %s25_s15, 3  ;;  %p173_p2 = scmp.lt.s32.totalorder %s611_s14, 4 }
   0x5   : > { %s681_s15 = smov (%p27_p1, %s25_s15), 0  ;;  %p174_p3 = pnand %p503_p0, %p173_p2 }
   0x6   : > { %p224_p4 = scmp.lt.s32.totalorder (!%p174_p3), %s603_s12, 2  ;;  %v613_v0 = vmov (!%p174_p3), 0.0   ;;  %vm614_vm0 = vmmov (!%p174_p3), 0   ;;  %v587_v3 = vld [vmem:[%s674_s0] sm:$0xff] (!%p174_p3)   ;;  %vm264_vm1 = vcmask (!%p174_p3), 261120  }
   0x7   : > { %177 = sbr.rel (%p174_p3) target bundleno = 242 (0xf2), region = 32  ;;  %543 = vmatprep.subr.bf16.mxu0 (!%p174_p3), %v613_v0  ;;  %551 = vmatprep.subr.bf16.mxu1 (!%p174_p3), %v613_v0  ;;  %v588_v4 = vld [vmem:[%s675_s1] sm:$0xff] (!%p174_p3)  }
   0x8   : > { %547 = vmatprep.mubr.msk.bf16.mxu0 (!%p174_p3), %vm614_vm0, %v613_v0  ;;  %555 = vmatprep.mubr.msk.bf16.mxu1 (!%p174_p3), %vm614_vm0, %v613_v0 }
   0xe   : > { %s683_s12 = smov (!%p224_p4, %s603_s12), 2 }
   0xf   : > { %s520_s16 = sshll.u32 %s683_s12, 4 }
  0x10   : > { %s228_s19 = scalar_lea.vmem %s676_s2, %s520_s16  ;;  %s238_s26 = scalar_lea.vmem %s677_s3, %s520_s16 }
  0x11   : > { %v585_v1 = vld [vmem:[%s228_s19] sm:$0xff]   ;;  %v586_v2 = vld [vmem:[%s228_s19 + $0x8] sm:$0xff]  }
  0x12   : > { %544 = vmatpush3.bf16.msra.mxu0 %v585_v1  ;;  %552 = vmatpush3.bf16.msra.mxu1 %v585_v1 }
  0x13   : > { %545 = vmatprep.subr.bf16.mxu0 %v613_v0  ;;  %553 = vmatprep.subr.bf16.mxu1 %v613_v0 }
  0x16   : > { %546 = vmatpush3.bf16.msra.mxu0 %v586_v2  ;;  %554 = vmatpush3.bf16.msra.mxu1 %v586_v2 }
  0x19   : > { %548 = vmatmul.mubr.msk.bf16.vlgmr.msra.gmra.mrb[0].mxu0 %vm264_vm1, %v587_v3  ;;  %556 = vmatmul.mubr.msk.bf16.vlgmr.msra.gmra.mrb[0].mxu1 %vm264_vm1, %v588_v4 }
  0xec   : > { %v302_v5 = vpop.f32.mrb[0].mxu0  ;;  %v353_v6 = vpop.f32.mrb[0].mxu1 }
  0xed   : > { %v529_v7 = vpack.c.bf16 %v353_v6, %v302_v5  ;;  %v549_v8 = vpop.f32.mrb[1].mxu0  ;;  %v557_v9 = vpop.f32.mrb[1].mxu1 }
  0xee   : > { %v305_v10 = vpop.f32.mrb[2].mxu0  ;;  %v356_v11 = vpop.f32.mrb[2].mxu1 }
  0xef   : > { %530 = vst [vmem:[%s238_s26] sm:$0xff] %v529_v7   ;;  %v534_v12 = vpack.c.bf16 %v356_v11, %v305_v10  ;;  %v550_v13 = vpop.f32.mrb[3].mxu0  ;;  %v558_v14 = vpop.f32.mrb[3].mxu1 }
  0xf1   : > { %536 = vst [vmem:[%s238_s26 + $0x8] sm:$0xff] %v534_v12  }
  0xf2 PF: > { %s13_s14 = sadd.s32 1, %s611_s14   ;;  %s678_s12 = smov %s607_s13 }
  0xf3   : > { %p10_p5 = scmp.ge.s32.totalorder %s13_s14, 5   ;;  %s679_s13 = smov %s681_s15 }
  0xf5   :  { %12 = sbr.rel (!%p10_p5) target bundleno = 2 (0x2), region = 68 }

// kernel: hemi_forward.6
= control target key start
LH: loop header
LB: loop body
LE: loop exit
PB: predicated region body
PF: predicated region fallthrough
CT: control target
= control target key end

     0   :  { %v211_v0 = vmov 0.0   ;;  %vm212_vm0 = vmmov 0   ;;  %vm38_vm1 = vcmask 261120   ;;  %s251_s2 = inlined_call_operand.vmem [shape: bf16[1,32,128], index: 2, kind: input, shape index: {}]   ;;  %s252_s0 = inlined_call_operand.vmem [shape: bf16[16,32], index: 0, kind: input, shape index: {}]   ;;  %s253_s1 = inlined_call_operand.vmem [shape: bf16[16,32], index: 1, kind: input, shape index: {}]   ;;  %s254_s3 = inlined_call_operand.vmem [shape: bf16[1,16,256], index: 3, kind: output, shape index: {}]  }
   0x1   :  { %189 = vmatprep.subr.bf16.mxu0 %v211_v0  ;;  %197 = vmatprep.subr.bf16.mxu1 %v211_v0  ;;  %v207_v1 = vld [vmem:[%s251_s2] sm:$0xff]   ;;  %v208_v2 = vld [vmem:[%s251_s2 + $0x8] sm:$0xff]  }
   0x2   :  { %193 = vmatprep.mubr.msk.bf16.mxu0 %vm212_vm0, %v211_v0  ;;  %201 = vmatprep.mubr.msk.bf16.mxu1 %vm212_vm0, %v211_v0  ;;  %v209_v3 = vld [vmem:[%s252_s0] sm:$0xff]  }
   0x3   :  { %190 = vmatpush3.bf16.msra.mxu0 %v207_v1  ;;  %198 = vmatpush3.bf16.msra.mxu1 %v207_v1  ;;  %v210_v4 = vld [vmem:[%s253_s1] sm:$0xff]  }
   0x4   :  { %191 = vmatprep.subr.bf16.mxu0 %v211_v0  ;;  %199 = vmatprep.subr.bf16.mxu1 %v211_v0 }
   0x7   :  { %192 = vmatpush3.bf16.msra.mxu0 %v208_v2  ;;  %200 = vmatpush3.bf16.msra.mxu1 %v208_v2 }
   0xa   :  { %194 = vmatmul.mubr.msk.bf16.vlgmr.msra.gmra.mrb[0].mxu0 %vm38_vm1, %v209_v3  ;;  %202 = vmatmul.mubr.msk.bf16.vlgmr.msra.gmra.mrb[0].mxu1 %vm38_vm1, %v210_v4 }
  0xdd   :  { %v76_v5 = vpop.f32.mrb[0].mxu0  ;;  %v127_v6 = vpop.f32.mrb[0].mxu1 }
  0xde   :  { %v175_v7 = vpack.c.bf16 %v127_v6, %v76_v5  ;;  %v195_v8 = vpop.f32.mrb[1].mxu0  ;;  %v203_v9 = vpop.f32.mrb[1].mxu1 }
  0xdf   :  { %v79_v10 = vpop.f32.mrb[2].mxu0  ;;  %v130_v11 = vpop.f32.mrb[2].mxu1 }
  0xe0   :  { %176 = vst [vmem:[%s254_s3] sm:$0xff] %v175_v7   ;;  %v180_v12 = vpack.c.bf16 %v130_v11, %v79_v10  ;;  %v196_v13 = vpop.f32.mrb[3].mxu0  ;;  %v204_v14 = vpop.f32.mrb[3].mxu1 }
  0xe2   :  { %182 = vst [vmem:[%s254_s3 + $0x8] sm:$0xff] %v180_v12  }

// kernel: hemi_forward.7
= control target key start
LH: loop header
LB: loop body
LE: loop exit
PB: predicated region body
PF: predicated region fallthrough
CT: control target
= control target key end

     0   :  { %s810_s21 = smov 0   ;;  %s812_s22 = smov 0   ;;  %s867_s0 = inlined_call_operand.vmem [shape: bf16[3,16,16], index: 0, kind: input, shape index: {}]   ;;  %s868_s1 = inlined_call_operand.vmem [shape: bf16[3,16,256], index: 1, kind: input, shape index: {}]   ;;  %s869_s2 = inlined_call_operand.vmem [shape: bf16[1,16,256], index: 2, kind: input, shape index: {}]   ;;  %s870_s3 = inlined_call_operand.vmem [shape: f32[3,1,256], index: 3, kind: input, shape index: {}]   ;;  %s871_s4 = inlined_call_operand.vmem [shape: f32[1,1,256], index: 4, kind: input, shape index: {}]   ;;  %s872_s5 = inlined_call_operand.vmem [shape: f32[3,16,256], index: 5, kind: output, shape index: {0}]   ;;  %s873_s6 = inlined_call_operand.vmem [shape: f32[3,16,256], index: 6, kind: output, shape index: {1}]  }
   0x1   :  { %s814_s23 = smov 0  }
   0x2 LB: > { %s29_s24 = sadd.s32 1, %s768_s22  ;;  %p695_p0 = scmp.ge.s32.totalorder %s772_s23, 1  ;;  %s772_s23 = sphi %s814_s23, %s17_s23   ;;  %s768_s22 = sphi %s812_s22, %s875_s22   ;;  %s764_s21 = sphi %s810_s21, %s874_s21  }
   0x3   : > { %p31_p1 = scmp.ge.s32.totalorder %s29_s24, 3  ;;  %p257_p2 = scmp.lt.s32.totalorder %s772_s23, 4 }
   0x5   : > { %s877_s24 = smov (%p31_p1, %s29_s24), 0  ;;  %p258_p3 = pnand %p695_p0, %p257_p2 }
   0x6   : > { %v743_v0 = vld [vmem:[%s869_s2 + $0x4] ss:$8 sps:$4 sm:$0xff] (!%p258_p3)   ;;  %p316_p4 = scmp.lt.s32.totalorder (!%p258_p3), %s764_s21, 2  ;;  %v745_v1 = vld [vmem:[%s869_s2] ss:$8 sps:$4 sm:$0xff] (!%p258_p3)   ;;  %v774_v2 = vmov (!%p258_p3), 0   ;;  %v363_v6 = vlaneseq (!%p258_p3) }
   0x7   : > { %261 = sbr.rel (%p258_p3) target bundleno = 242 (0xf2), region = 40  ;;  %499 = vmatprep.mubr.bf16.mxu1 (!%p258_p3), %v774_v2  ;;  %424 = vmatprep.mubr.bf16.mxu0 (!%p258_p3), %v774_v2  ;;  %vm388_vm0 = vcmask (!%p258_p3), 130048   ;;  %v445_v9 = vld [vmem:[%s871_s4] sm:$0x3] (!%p258_p3) }
   0x8   : > { %467 = vmatprep.subr.bf16.mxu1 (!%p258_p3), %v743_v0  ;;  %v364_v7 = vshrl.u32 (!%p258_p3), %v363_v6, 7 }
   0x9   : > { %468 = vmatpush1.bf16.msra.mxu1 (!%p258_p3), %v745_v1 }
   0xa   : > { %v365_v8 = vsub.s32 (!%p258_p3), 0, %v364_v7  ;;  %v369_v10 = vsub.s32 (!%p258_p3), 1, %v364_v7 }
   0xc   : > { %v450_v12 = vrot.slane (!%p258_p3), %v445_v9, %v365_v8  ;;  %v454_v13 = vrot.slane (!%p258_p3), %v445_v9, %v369_v10 }
   0xe   : > { %s879_s21 = smov (!%p316_p4, %s764_s21), 2 }
   0xf   : > { %s715_s29 = sshll.u32 %s879_s21, 4  ;;  %s714_s30 = sshll.u32 %s879_s21, 3 }
  0x10   : > { %s329_s9 = scalar_lea.vmem %s868_s1, %s715_s29  ;;  %s323_s12 = scalar_lea.vmem %s867_s0, %s714_s30 }
  0x11   : > { %v746_v3 = vld [vmem:[%s329_s9 + $0x4] ss:$8 sps:$4 sm:$0xff]   ;;  %v748_v4 = vld [vmem:[%s329_s9] ss:$8 sps:$4 sm:$0xff]   ;;  %s700_s13 = sshll.u32 %s879_s21, 1  ;;  %s716_s19 = sshll.u32 %s879_s21, 5 }
  0x12   : > { %392 = vmatprep.subr.bf16.mxu0 %v746_v3  ;;  %v749_v5 = vld [vmem:[%s323_s12] sm:$0xff]   ;;  %s333_s16 = scalar_lea.vmem %s870_s3, %s700_s13  ;;  %s354_s26 = scalar_lea.vmem %s873_s6, %s716_s19 }
  0x13   : > { %393 = vmatpush1.bf16.msra.mxu0 %v748_v4  ;;  %711 = vmatmul.mubr.msk.bf16.vlgmr.msra.gmra.mrb[0].mxu1 %vm388_vm0, %v749_v5  ;;  %v361_v11 = vld [vmem:[%s333_s16] sm:$0x3]  ;;  %s343_s28 = scalar_lea.vmem %s872_s5, %s716_s19 }
  0x14   : > { %v366_v14 = vrot.slane %v361_v11, %v365_v8  ;;  %v370_v16 = vrot.slane %v361_v11, %v369_v10 }
  0x16   : > { %708 = vmatmul.mubr.msk.bf16.vlgmr.msra.gmra.mrb[0].mxu0 %vm388_vm0, %v749_v5 }
  0xe6   : > { %v501_v15 = vpop.f32.mrb[0].mxu1 }
  0xe7   : > { %v502_v17 = vadd.f32 %v501_v15, %v450_v12  ;;  %v503_v18 = vpop.f32.mrb[1].mxu1 }
  0xe8   : > { %v504_v19 = vadd.f32 %v503_v18, %v454_v13  ;;  %v505_v20 = vpop.f32.mrb[2].mxu1 }
  0xe9   : > { %v426_v21 = vpop.f32.mrb[0].mxu0  ;;  %v510_v22 = vmax.f32 %v502_v17, 0.0  ;;  %v506_v23 = vadd.f32 %v505_v20, %v450_v12  ;;  %v507_v25 = vpop.f32.mrb[3].mxu1 }
  0xea   : > { %v427_v24 = vadd.f32 %v426_v21, %v366_v14  ;;  %v428_v26 = vpop.f32.mrb[1].mxu0  ;;  %v511_v27 = vmax.f32 %v504_v19, 0.0  ;;  %v508_v28 = vadd.f32 %v507_v25, %v454_v13 }
  0xeb   : > { %v429_v29 = vadd.f32 %v428_v26, %v370_v16  ;;  %v430_v30 = vpop.f32.mrb[2].mxu0  ;;  %514 = vst [vmem:[%s354_s26] sm:$0xff] %v510_v22  ;;  %v512_v31 = vmax.f32 %v506_v23, 0.0 }
  0xec   : > { %v435_v32 = vmax.f32 %v427_v24, 0.0  ;;  %v431_v33 = vadd.f32 %v430_v30, %v366_v14  ;;  %v432_v34 = vpop.f32.mrb[3].mxu0  ;;  %515 = vst [vmem:[%s354_s26 + $0x8] sm:$0xff] %v511_v27  ;;  %v513_v35 = vmax.f32 %v508_v28, 0.0 }
  0xed   : > { %v436_v36 = vmax.f32 %v429_v29, 0.0  ;;  %v433_v37 = vadd.f32 %v432_v34, %v370_v16  ;;  %516 = vst [vmem:[%s354_s26 + $0x10] sm:$0xff] %v512_v31 }
  0xee   : > { %439 = vst [vmem:[%s343_s28] sm:$0xff] %v435_v32  ;;  %v437_v38 = vmax.f32 %v431_v33, 0.0  ;;  %517 = vst [vmem:[%s354_s26 + $0x18] sm:$0xff] %v513_v35 }
  0xef   : > { %440 = vst [vmem:[%s343_s28 + $0x8] sm:$0xff] %v436_v36  ;;  %v438_v39 = vmax.f32 %v433_v37, 0.0 }
  0xf0   : > { %441 = vst [vmem:[%s343_s28 + $0x10] sm:$0xff] %v437_v38 }
  0xf1   : > { %442 = vst [vmem:[%s343_s28 + $0x18] sm:$0xff] %v438_v39 }
  0xf2 PF: > { %s17_s23 = sadd.s32 1, %s772_s23   ;;  %s874_s21 = smov %s768_s22 }
  0xf3   : > { %p14_p5 = scmp.ge.s32.totalorder %s17_s23, 5   ;;  %s875_s22 = smov %s877_s24 }
  0xf5   :  { %16 = sbr.rel (!%p14_p5) target bundleno = 2 (0x2), region = 88 }

// kernel: hemi_forward.9
= control target key start
LH: loop header
LB: loop body
LE: loop exit
PB: predicated region body
PF: predicated region fallthrough
CT: control target
= control target key end

     0   :  { %12 = vsyncpa [#allocation4], 0  ;;  %s1256_s21 = smov 0   ;;  %s1258_s22 = smov 0   ;;  %s1523_s0 = inlined_call_operand.vmem [shape: f32[3,16,256], index: 0, kind: input, shape index: {}]   ;;  %s1524_s1 = inlined_call_operand.vmem [shape: f32[3,1,256], index: 1, kind: input, shape index: {}]   ;;  %s1525_s2 = inlined_call_operand.vmem [shape: bf16[16,256], index: 2, kind: input, shape index: {}]   ;;  %s1526_s3 = inlined_call_operand.vmem [shape: bf16[3,128,256], index: 3, kind: input, shape index: {}]   ;;  %s1527_s4 = inlined_call_operand.vmem [shape: f32[3,2], index: 4, kind: input, shape index: {}]   ;;  %s1528_s5 = inlined_call_operand.vmem [shape: f32[3,1,1], index: 5, kind: output, shape index: {0}]   ;;  %s1529_s6 = inlined_call_operand.vmem [shape: f32[3,1,1], index: 6, kind: output, shape index: {1}]  }
   0x1   :  { %s1260_s23 = smov 0   ;;  %s1262_s24 = smov 0  }
   0x2   :  { %s1264_s25 = smov 0  }
   0x3 LB: > { %s986_s26 = sadd.s32 4294967295, %s1216_s25   ;;  %s30_s27 = sadd.s32 1, %s1212_s24  ;;  %s1216_s25 = sphi %s1264_s25, %s18_s25   ;;  %s1212_s24 = sphi %s1262_s24, %s1548_s24   ;;  %s1208_s23 = sphi %s1260_s23, %s1547_s23   ;;  %s1204_s22 = sphi %s1258_s22, %s1546_s22   ;;  %s1200_s21 = sphi %s1256_s21, %s1545_s21  }
   0x4   : > { %p32_p0 = scmp.ge.s32.totalorder %s30_s27, 3  ;;  %s39_s28 = sadd.s32 1, %s1204_s22 }
   0x5   : > { %p46_p1 = scmp.ne.s32.totalorder %s1204_s22, %s1200_s21  ;;  %p47_p2 = scmp.eq.s32.totalorder %s1216_s25, 0 }
   0x6   : > { %s1550_s27 = smov (%p32_p0, %s30_s27), 0  ;;  %p988_p4 = scmp.ge.s32.totalorder %s1216_s25, 1 }
   0x7   : > { %p1289_p3 = por %p47_p2, %p46_p1  ;;  %s34_s30 = ssub.s32 %s1212_s24, %s1550_s27 }
   0x8   : > { %p214_p5 = scmp.lt.s32.totalorder %s1216_s25, 4  ;;  %p37_p6 = scmp.eq.s32.totalorder %s34_s30, 0 }
   0x9   : > { %p1301_p8 = scmp.eq.s32.totalorder %s986_s26, 0  ;;  %s237_s12 = sshll.u32 %s1527_s4, 4  ;;  %s238_s12 = int_to_ptr.vmem [resolvable:$true] %s237_s12 }
   0xa   : > { %p1297_p7 = pnand %p988_p4, %p214_p5  ;;  %s1159_s13 = scalar_lea.vmem %s238_s12, 64 }
   0xb   : > { %s1306_s9 = scalar_select %p37_p6, %s1204_s22, %s39_s28  }
   0xc   : > { %p1039_p9 = pneg %p1297_p7  ;;  %p1160_p11 = scmp.ne.s32.totalorder %s238_s12, %s1159_s13 }
   0xd   : > { %p1167_p1 = scmp.lt.s32.totalorder %s238_s12, %s238_s12  ;;  %p1168_p2 = scmp.lt.s32.totalorder %s1159_s13, %s1159_s13 }
   0xe   : > { %p1040_p10 = pnand %p1301_p8, %p1039_p9 }
   0xf   : > { %p1169_p4 = por %p1168_p2, %p1167_p1 }
  0x10   : > { %p1161_p12 = pneg %p1040_p10 }
  0x12   : > { %p1162_p13 = pnand %p1161_p12, %p1160_p11 }
  0x14   : > { %p1163_p0 = pneg %p1162_p13 }
  0x16   : > { %p1170_p5 = pnand %p1169_p4, %p1163_p0 }
  0x18   : > { %1173 = shalt.err (!%p1170_p5)
}
  0x19   : > { %s1218_s14 = smov [#allocation3]   ;;  %p991_p6 = scmp.ge.s32.totalorder %s1216_s25, 3 }
  0x1a   : > { %1042 = dma.vmem_to_smem (!%p1040_p10), %s238_s12, 64, %s1218_s14, [#allocation4]  }
  0x1b   : > { %244 = sbr.rel (%p991_p6) target bundleno = 41 (0x29), region = 24 }
  0x22   : > { %247 = sbr.rel (!%p1289_p3) target bundleno = 41 (0x29), region = 28  ;;  %s249_s15 = sand.u32 (%p1289_p3), 1, %s1204_s22  }
  0x23   : > { %s1025_s16 = sshll.u32 (%p1289_p3), %s1212_s24, 5  ;;  %s992_s17 = sshll.u32 (%p1289_p3), %s249_s15, 4 }
  0x24   : > { %s257_s20 = scalar_lea.vmem (%p1289_p3), %s1523_s0, %s1025_s16  ;;  %s251_s26 = scalar_lea.vmem (%p1289_p3), [#allocation2], %s992_s17 }
  0x25   : > { %v287_v0 = vld [vmem:[%s257_s20] sm:$0xff] (%p1289_p3)  ;;  %v289_v1 = vld [vmem:[%s257_s20 + $0x10] sm:$0xff] (%p1289_p3) }
  0x26   : > { %288 = vst [vmem:[%s251_s26] sm:$0xff] (%p1289_p3), %v287_v0  ;;  %290 = vst [vmem:[%s251_s26 + $0x8] sm:$0xff] (%p1289_p3), %v289_v1 }
  0x29 PF: > { %314 = sbr.rel (%p1297_p7) target bundleno = 713 (0x2c9), region = 74  ;;  %s317_s28 = sand.u32 (!%p1297_p7), 1, %s1200_s21  }
  0x2a   : > { %s1326_s29 = sshll.u32 (!%p1297_p7), %s317_s28, 4 }
  0x2b   : > { %s319_s30 = scalar_lea.vmem (!%p1297_p7), [#allocation2], %s1326_s29 }
  0x30   : > { %1195 = dma.done.wait (%p1301_p8), [#allocation4], 64  }
  0x31   : > { %1197 = vsyncadd (%p1301_p8), [#allocation4], 4294967232 }
  0x32   : > { %327 = sfence }
  0x33   : > { %p368_p3 = scmp.lt.s32.totalorder %s1208_s23, 2  ;;  %v1219_v2 = vmov 0   ;;  %v1112_v19 = vld [vmem:[%s1525_s2] ss:$8 sps:$4 sm:$0xff]   ;;  %v1114_v20 = vld [vmem:[%s1525_s2 + $0x4] ss:$8 sps:$4 sm:$0xff]   ;;  %v635_v32 = vlaneseq }
  0x34   : > { %534 = vmatprep.mubr.bf16.mxu0 %v1219_v2  ;;  %581 = vmatprep.mubr.bf16.mxu1 %v1219_v2  ;;  %v592_v22 = vld [vmem:[%s319_s30] sm:$0xff]  ;;  %v593_v25 = vld [vmem:[%s319_s30 + $0x8] sm:$0xff]  ;;  %s1022_s20 = sshll.u32 %s1208_s23, 7  ;;  %vm690_vm0 = vcmask 7168   ;;  %vm395_vm9 = vcmask 0  }
  0x35   : > { %s1335_s7 = scalar_select %p368_p3, %s1208_s23, 2  ;;  %v1019_v24 = vmul.f32 -1.442695, %v592_v22  ;;  %v1020_v26 = vmul.f32 -1.442695, %v593_v25  ;;  %v636_v34 = vshrl.u32 %v635_v32, 7 }
  0x36   : > { %s615_s26 = sadd.s32 1, %s1022_s20  ;;  %s614_s28 = sld [smem:[#allocation3 + %s1022_s20]] }
  0x37   : > { %s1026_s21 = sshll.u32 %s1335_s7, 7  ;;  %s998_s16 = sshll.u32 %s1335_s7, 1  ;;  %v637_v35 = vsub.s32 0, %v636_v34 }
  0x38   : > { %s1341_s12 = scalar_lea.vmem %s1526_s3, %s1026_s21  ;;  %s371_s19 = scalar_lea.vmem %s1524_s1, %s998_s16 }
  0x39   : > { %v1088_v3 = vld [vmem:[%s1341_s12 + $0x4] ss:$8 sps:$4 sm:$0xff]   ;;  %v1090_v4 = vld [vmem:[%s1341_s12] ss:$8 sps:$4 sm:$0xff]   ;;  %v1091_v5 = vld [vmem:[%s1341_s12 + $0x14] ss:$8 sps:$4 sm:$0xff]   ;;  %s1490_s21 = scalar_lea.vmem %s1528_s5, %s1335_s7 }
  0x3a   : > { %502 = vmatprep.subr.bf16.mxu0 %v1088_v3  ;;  %549 = vmatprep.subr.bf16.mxu1 %v1088_v3  ;;  %v1093_v6 = vld [vmem:[%s1341_s12 + $0x10] ss:$8 sps:$4 sm:$0xff]   ;;  %v1094_v7 = vld [vmem:[%s1341_s12 + $0x24] ss:$8 sps:$4 sm:$0xff]   ;;  %v1096_v8 = vld [vmem:[%s1341_s12 + $0x20] ss:$8 sps:$4 sm:$0xff]  }
  0x3b   : > { %503 = vmatpush1.bf16.msra.mxu0 %v1090_v4  ;;  %550 = vmatpush1.bf16.msra.mxu1 %v1090_v4  ;;  %v1097_v9 = vld [vmem:[%s1341_s12 + $0x34] ss:$8 sps:$4 sm:$0xff]   ;;  %v1099_v10 = vld [vmem:[%s1341_s12 + $0x30] ss:$8 sps:$4 sm:$0xff]   ;;  %v1100_v11 = vld [vmem:[%s1341_s12 + $0x44] ss:$8 sps:$4 sm:$0xff]  }
  0x3c   : > { %504 = vmatprep.subr.bf16.mxu0 %v1091_v5  ;;  %551 = vmatprep.subr.bf16.mxu1 %v1091_v5  ;;  %v1102_v12 = vld [vmem:[%s1341_s12 + $0x40] ss:$8 sps:$4 sm:$0xff]   ;;  %v1103_v13 = vld [vmem:[%s1341_s12 + $0x54] ss:$8 sps:$4 sm:$0xff]   ;;  %v1105_v14 = vld [vmem:[%s1341_s12 + $0x50] ss:$8 sps:$4 sm:$0xff]   ;;  %v623_v56 = vstv %s614_s28 }
  0x3d   : > { %v1106_v15 = vld [vmem:[%s1341_s12 + $0x64] ss:$8 sps:$4 sm:$0xff]   ;;  %v1108_v16 = vld [vmem:[%s1341_s12 + $0x60] ss:$8 sps:$4 sm:$0xff]   ;;  %v1109_v17 = vld [vmem:[%s1341_s12 + $0x74] ss:$8 sps:$4 sm:$0xff]  }
  0x3e   : > { %v1111_v18 = vld [vmem:[%s1341_s12 + $0x70] ss:$8 sps:$4 sm:$0xff]   ;;  %v606_v21 = vld [vmem:[%s371_s19] sm:$0x1]  ;;  %s616_s29 = sld [smem:[#allocation3 + %s615_s26]]  ;;  %s1498_s12 = scalar_lea.vmem %s1529_s6, %s1335_s7 }
  0x3f   : > { %505 = vmatpush1.bf16.msra.mxu0 %v1093_v6  ;;  %552 = vmatpush1.bf16.msra.mxu1 %v1093_v6  ;;  %v1021_v23 = vmul.f32 -1.442695, %v606_v21 }
  0x40   : > { %506 = vmatprep.subr.bf16.mxu0 %v1094_v7  ;;  %553 = vmatprep.subr.bf16.mxu1 %v1094_v7 }
  0x41   : > { %1115 = vpow2.f32 %v1021_v23 }
  0x42   : > { %1117 = vpow2.f32 %v1019_v24 }
  0x43   : > { %507 = vmatpush1.bf16.msra.mxu0 %v1096_v8  ;;  %554 = vmatpush1.bf16.msra.mxu1 %v1096_v8  ;;  %1119 = vpow2.f32 %v1020_v26 }
  0x44   : > { %508 = vmatprep.subr.bf16.mxu0 %v1097_v9  ;;  %555 = vmatprep.subr.bf16.mxu1 %v1097_v9  ;;  %v646_v57 = vstv %s616_s29 }
  0x47   : > { %509 = vmatpush1.bf16.msra.mxu0 %v1099_v10  ;;  %556 = vmatpush1.bf16.msra.mxu1 %v1099_v10 }
  0x48   : > { %510 = vmatprep.subr.bf16.mxu0 %v1100_v11  ;;  %557 = vmatprep.subr.bf16.mxu1 %v1100_v11 }
  0x4b   : > { %511 = vmatpush1.bf16.msra.mxu0 %v1102_v12  ;;  %558 = vmatpush1.bf16.msra.mxu1 %v1102_v12  ;;  %v1116_v27 = vpop.eup %1115 }
  0x4c   : > { %512 = vmatprep.subr.bf16.mxu0 %v1103_v13  ;;  %559 = vmatprep.subr.bf16.mxu1 %v1103_v13  ;;  %v1118_v28 = vpop.eup %1117  ;;  %v610_v29 = vadd.f32 1.0, %v1116_v27 }
  0x4d   : > { %v600_v30 = vadd.f32 1.0, %v1118_v28  ;;  %v1120_v31 = vpop.eup %1119 }
  0x4e   : > { %1121 = vrcp.f32 %v610_v29  ;;  %v601_v33 = vadd.f32 1.0, %v1120_v31 }
  0x4f   : > { %513 = vmatpush1.bf16.msra.mxu0 %v1105_v14  ;;  %560 = vmatpush1.bf16.msra.mxu1 %v1105_v14  ;;  %1123 = vrcp.f32 %v600_v30 }
  0x50   : > { %514 = vmatprep.subr.bf16.mxu0 %v1106_v15  ;;  %561 = vmatprep.subr.bf16.mxu1 %v1106_v15  ;;  %1125 = vrcp.f32 %v601_v33 }
  0x53   : > { %515 = vmatpush1.bf16.msra.mxu0 %v1108_v16  ;;  %562 = vmatpush1.bf16.msra.mxu1 %v1108_v16 }
  0x54   : > { %516 = vmatprep.subr.bf16.mxu0 %v1109_v17  ;;  %563 = vmatprep.subr.bf16.mxu1 %v1109_v17 }
  0x57   : > { %517 = vmatpush1.bf16.msra.mxu0 %v1111_v18  ;;  %564 = vmatpush1.bf16.msra.mxu1 %v1111_v18 }
  0x58   : > { %v1122_v36 = vpop.eup %1121 }
  0x59   : > { %v1124_v37 = vpop.eup %1123  ;;  %v638_v38 = vrot.slane %v1122_v36, %v637_v35 }
  0x5a   : > { %535 = vmatmul.mubr.bf16.vlgmr.msra.gmra.mrb[0].mxu0 %v1112_v19  ;;  %582 = vmatmul.mubr.bf16.vlgmr.msra.gmra.mrb[0].mxu1 %v1114_v20  ;;  %v1126_v47 = vpop.eup %1125 }
 0x12d   : > { %v536_v39 = vpop.f32.mrb[0].mxu0  ;;  %v583_v40 = vpop.f32.mrb[0].mxu1 }
 0x12e   : > { %v538_v41 = vpop.f32.mrb[1].mxu0  ;;  %v585_v42 = vpop.f32.mrb[1].mxu1  ;;  %v617_v43 = vmul.f32 %v1124_v37, %v536_v39  ;;  %v626_v48 = vmul.f32 %v1124_v37, %v583_v40 }
 0x12f   : > { %v540_v44 = vpop.f32.mrb[2].mxu0  ;;  %v587_v45 = vpop.f32.mrb[2].mxu1  ;;  %v640_v46 = vmul.f32 %v638_v38, %v538_v41  ;;  %v649_v54 = vmul.f32 %v638_v38, %v585_v42 }
 0x130   : > { %619 = vadd.xlane.f32.xlu0 %v617_v43  ;;  %v542_v49 = vpop.f32.mrb[3].mxu0  ;;  %v589_v50 = vpop.f32.mrb[3].mxu1  ;;  %v627_v51 = vmul.f32 %v1126_v47, %v587_v45  ;;  %v618_v52 = vmul.f32 %v1126_v47, %v540_v44 }
 0x131   : > { %642 = vadd.xlane.f32.xlu1 %v640_v46  ;;  %v641_v53 = vmul.f32 %v638_v38, %v542_v49  ;;  %v650_v55 = vmul.f32 %v638_v38, %v589_v50 }
 0x134   : > { %628 = vadd.xlane.f32.xlu0 %v626_v48 }
 0x135   : > { %630 = vadd.xlane.f32.xlu1 %v627_v51 }
 0x138   : > { %621 = vadd.xlane.f32.xlu0 %v618_v52 }
 0x139   : > { %644 = vadd.xlane.f32.xlu1 %v641_v53 }
 0x13c   : > { %651 = vadd.xlane.f32.xlu0 %v649_v54 }
 0x13d   : > { %653 = vadd.xlane.f32.xlu1 %v650_v55 }
 0x1bd   : > { %v620_v58 = vpop.xlane.xlu0 %619 }
 0x1be   : > { %v1374_v59 = vadd.f32 %v623_v56, %v620_v58  ;;  %v643_v60 = vpop.xlane.xlu1 %642 }
 0x1bf   : > { %v1376_v61 = vadd.f32 %v646_v57, %v643_v60 }
 0x1c0   : > { %v658_v62 = vsub.f32 0.0, %v1374_v59 }
 0x1c1   : > { %v753_v63 = vsub.f32 0.0, %v1376_v61  ;;  %v629_v0 = vpop.xlane.xlu0 %628 }
 0x1c2   : > { %v662_v1 = vand.u32 2147483647, %v658_v62  ;;  %v1380_v2 = vadd.f32 %v629_v0, %v623_v56  ;;  %v631_v3 = vpop.xlane.xlu1 %630  ;;  %v1397_v49 = vmax.f32 %v658_v62, 0.0 }
 0x1c3   : > { %v757_v4 = vand.u32 2147483647, %v753_v63  ;;  %v1382_v5 = vadd.f32 %v631_v3, %v623_v56  ;;  %v1399_v50 = vmax.f32 %v753_v63, 0.0 }
 0x1c4   : > { %v664_v6 = vsub.f32 0.0, %v662_v1  ;;  %v706_v7 = vand.u32 2147483647, %v1380_v2  ;;  %v704_v51 = vmax.f32 %v1380_v2, 0.0 }
 0x1c5   : > { %v759_v8 = vsub.f32 0.0, %v757_v4  ;;  %v707_v9 = vand.u32 2147483647, %v1382_v5  ;;  %v622_v10 = vpop.xlane.xlu0 %621  ;;  %v705_v52 = vmax.f32 %v1382_v5, 0.0 }
 0x1c6   : > { %v666_v11 = vmul.f32 1.442695, %v664_v6  ;;  %v708_v12 = vsub.f32 0.0, %v706_v7  ;;  %v625_v13 = vadd.f32 %v623_v56, %v622_v10  ;;  %v645_v14 = vpop.xlane.xlu1 %644 }
 0x1c7   : > { %v761_v15 = vmul.f32 1.442695, %v759_v8  ;;  %v709_v16 = vsub.f32 0.0, %v707_v9  ;;  %v648_v17 = vadd.f32 %v646_v57, %v645_v14 }
 0x1c8   : > { %1127 = vpow2.f32 %v666_v11  ;;  %v710_v18 = vmul.f32 1.442695, %v708_v12  ;;  %v659_v19 = vsub.f32 0.0, %v625_v13 }
 0x1c9   : > { %1129 = vpow2.f32 %v761_v15  ;;  %v712_v20 = vmul.f32 1.442695, %v709_v16  ;;  %v754_v21 = vsub.f32 0.0, %v648_v17  ;;  %v652_v22 = vpop.xlane.xlu0 %651 }
 0x1ca   : > { %1131 = vpow2.f32 %v710_v18  ;;  %v663_v23 = vand.u32 2147483647, %v659_v19  ;;  %v1386_v24 = vadd.f32 %v652_v22, %v646_v57  ;;  %v654_v25 = vpop.xlane.xlu1 %653  ;;  %v1405_v54 = vmax.f32 %v659_v19, 0.0 }
 0x1cb   : > { %1133 = vpow2.f32 %v712_v20  ;;  %v758_v26 = vand.u32 2147483647, %v754_v21  ;;  %v1388_v27 = vadd.f32 %v654_v25, %v646_v57  ;;  %v1410_v59 = vmax.f32 %v754_v21, 0.0 }
 0x1cc   : > { %v665_v28 = vsub.f32 0.0, %v663_v23  ;;  %v800_v29 = vand.u32 2147483647, %v1386_v24  ;;  %v798_v3 = vmax.f32 %v1386_v24, 0.0 }
 0x1cd   : > { %v760_v30 = vsub.f32 0.0, %v758_v26  ;;  %v801_v31 = vand.u32 2147483647, %v1388_v27  ;;  %v799_v8 = vmax.f32 %v1388_v27, 0.0  ;;  %v1220_v27 = vmov 0.0  }
 0x1ce   : > { %v668_v32 = vmul.f32 1.442695, %v665_v28  ;;  %v802_v33 = vsub.f32 0.0, %v800_v29  ;;  %396 = vst.msk [vmem:[%s1490_s21] sm:$0x1] %vm395_vm9, %v1220_v27 }
 0x1cf   : > { %v763_v34 = vmul.f32 1.442695, %v760_v30  ;;  %v803_v35 = vsub.f32 0.0, %v801_v31  ;;  %397 = vst.msk [vmem:[%s1498_s12] sm:$0x1] %vm395_vm9, %v1220_v27 }
 0x1d0   : > { %1135 = vpow2.f32 %v668_v32  ;;  %v804_v36 = vmul.f32 1.442695, %v802_v33 }
 0x1d1   : > { %1137 = vpow2.f32 %v763_v34  ;;  %v806_v37 = vmul.f32 1.442695, %v803_v35 }
 0x1d2   : > { %v1128_v38 = vpop.eup %1127  ;;  %1139 = vpow2.f32 %v804_v36 }
 0x1d3   : > { %v1392_v39 = vpop.eup %1129  ;;  %1141 = vpow2.f32 %v806_v37  ;;  %v670_v40 = vadd.f32 1.0, %v1128_v38  ;;  %v673_v46 = vmul.f32 -0.5, %v1128_v38  ;;  %v676_v62 = vand.u32 2147483647, %v1128_v38 }
 0x1d4   : > { %v1132_v41 = vpop.eup %1131  ;;  %v765_v44 = vadd.f32 1.0, %v1392_v39  ;;  %v768_v5 = vmul.f32 -0.5, %v1392_v39  ;;  %v771_v6 = vand.u32 2147483647, %v1392_v39 }
 0x1d5   : > { %v1134_v42 = vpop.eup %1133  ;;  %v714_v43 = vadd.f32 1.0, %v1132_v41  ;;  %1143 = vlog2.f32 %v670_v40  ;;  %v717_v47 = vmul.f32 -0.5, %v1132_v41  ;;  %v720_v55 = vand.u32 2147483647, %v1132_v41 }
 0x1d6   : > { %v723_v45 = vadd.f32 1.0, %v1134_v42  ;;  %v726_v56 = vmul.f32 -0.5, %v1134_v42  ;;  %v729_v60 = vand.u32 2147483647, %v1134_v42  ;;  %v674_v61 = vadd.f32 1.0, %v673_v46 }
 0x1d7   : > { %1145 = vlog2.f32 %v714_v43  ;;  %v718_v0 = vadd.f32 1.0, %v717_v47  ;;  %vm1421_vm1 = vcmp.lt.f32.partialorder %v720_v55, 0.0004427343  ;;  %vm1429_vm3 = vcmp.lt.f32.partialorder %v676_v62, 0.0004427343 }
 0x1d8   : > { %1147 = vlog2.f32 %v723_v45  ;;  %v727_v10 = vadd.f32 1.0, %v726_v56  ;;  %vm1425_vm2 = vcmp.lt.f32.partialorder %v729_v60, 0.0004427343  ;;  %v675_v17 = vmul.f32 %v1128_v38, %v674_v61 }
 0x1d9   : > { %1149 = vlog2.f32 %v765_v44  ;;  %v719_v15 = vmul.f32 %v1132_v41, %v718_v0  ;;  %v769_v21 = vadd.f32 1.0, %v768_v5  ;;  %vm1435_vm4 = vcmp.lt.f32.partialorder %v771_v6, 0.0004427343 }
 0x1da   : > { %v1395_v48 = vpop.eup %1135  ;;  %v728_v26 = vmul.f32 %v1134_v42, %v727_v10 }
 0x1db   : > { %v1403_v53 = vpop.eup %1137  ;;  %v679_v57 = vadd.f32 1.0, %v1395_v48  ;;  %v682_v13 = vmul.f32 -0.5, %v1395_v48  ;;  %v685_v32 = vand.u32 2147483647, %v1395_v48  ;;  %v770_v42 = vmul.f32 %v1392_v39, %v769_v21 }
 0x1dc   : > { %v1408_v58 = vpop.eup %1139  ;;  %v774_v2 = vadd.f32 1.0, %v1403_v53  ;;  %v777_v29 = vmul.f32 -0.5, %v1403_v53  ;;  %v780_v47 = vand.u32 2147483647, %v1403_v53 }
 0x1dd   : > { %v1412_v63 = vpop.eup %1141  ;;  %1151 = vlog2.f32 %v679_v57  ;;  %v808_v1 = vadd.f32 1.0, %v1408_v58  ;;  %v811_v20 = vmul.f32 -0.5, %v1408_v58  ;;  %v683_v31 = vadd.f32 1.0, %v682_v13 }
 0x1de   : > { %v817_v4 = vadd.f32 1.0, %v1412_v63  ;;  %v820_v28 = vmul.f32 -0.5, %v1412_v63  ;;  %v814_v33 = vand.u32 2147483647, %v1408_v58  ;;  %v823_v37 = vand.u32 2147483647, %v1412_v63 }
 0x1df   : > { %v1144_v7 = vpop.eup %1143  ;;  %1153 = vlog2.f32 %v808_v1  ;;  %v812_v40 = vadd.f32 1.0, %v811_v20  ;;  %v778_v46 = vadd.f32 1.0, %v777_v29  ;;  %v684_v56 = vmul.f32 %v1395_v48, %v683_v31 }
 0x1e0   : > { %1155 = vlog2.f32 %v817_v4  ;;  %v672_v16 = vmul.f32 0.6931472, %v1144_v7  ;;  %v821_v45 = vadd.f32 1.0, %v820_v28  ;;  %vm686_vm5 = vcmp.lt.f32.partialorder %v685_v32, 0.0004427343 }
 0x1e1   : > { %v1146_v14 = vpop.eup %1145  ;;  %1157 = vlog2.f32 %v774_v2  ;;  %vm1456_vm6 = vcmp.lt.f32.partialorder %v814_v33, 0.0004427343  ;;  %vm1460_vm7 = vcmp.lt.f32.partialorder %v823_v37, 0.0004427343  ;;  %v813_v2 = vmul.f32 %v1408_v58, %v812_v40 }
 0x1e2   : > { %v1148_v18 = vpop.eup %1147  ;;  %v716_v19 = vmul.f32 0.6931472, %v1146_v14  ;;  %v678_v36 = vsel %vm1429_vm3, %v675_v17, %v672_v16  ;;  %v822_v6 = vmul.f32 %v1412_v63, %v821_v45  ;;  %v779_v7 = vmul.f32 %v1403_v53, %v778_v46 }
 0x1e3   : > { %v1150_v23 = vpop.eup %1149  ;;  %v725_v25 = vmul.f32 0.6931472, %v1148_v18  ;;  %v688_v57 = vadd.f32 %v678_v36, %v1397_v49  ;;  %vm781_vm8 = vcmp.lt.f32.partialorder %v780_v47, 0.0004427343 }
 0x1e4   : > { %v722_v30 = vsel %vm1421_vm1, %v719_v15, %v716_v19  ;;  %v767_v41 = vmul.f32 0.6931472, %v1150_v23 }
 0x1e5   : > { %v731_v34 = vsel %vm1425_vm2, %v728_v26, %v725_v25  ;;  %v732_v35 = vadd.f32 %v722_v30, %v704_v51  ;;  %v691_v9 = vsel %vm690_vm0, %v688_v57, 0.0  ;;  %v657_v57 = vld [vmem:[%s1490_s21] sm:$0x1] }
 0x1e6   : > { %v733_v38 = vadd.f32 %v731_v34, %v705_v52  ;;  %v773_v48 = vsel %vm1435_vm4, %v770_v42, %v767_v41 }
 0x1e7   : > { %v1152_v43 = vpop.eup %1151  ;;  %v734_v44 = vsel %vm690_vm0, %v732_v35, 0.0  ;;  %v783_v63 = vadd.f32 %v773_v48, %v1399_v50 }
 0x1e8   : > { %v735_v55 = vsel %vm690_vm0, %v733_v38, 0.0  ;;  %v681_v51 = vmul.f32 0.6931472, %v1152_v43 }
 0x1e9   : > { %v1154_v60 = vpop.eup %1153  ;;  %v736_v52 = vadd.f32 %v735_v55, %v734_v44  ;;  %v785_v24 = vsel %vm690_vm0, %v783_v63, 0.0 }
 0x1ea   : > { %v1156_v62 = vpop.eup %1155  ;;  %v687_v0 = vsel %vm686_vm5, %v684_v56, %v681_v51  ;;  %v810_v1 = vmul.f32 0.6931472, %v1154_v60 }
 0x1eb   : > { %v1158_v49 = vpop.eup %1157  ;;  %737 = vadd.xlane.f32.xlu1 %v736_v52  ;;  %v689_v4 = vadd.f32 %v687_v0, %v1405_v54  ;;  %v819_v5 = vmul.f32 0.6931472, %v1156_v62  ;;  %v752_v0 = vld [vmem:[%s1498_s12] sm:$0x1] }
 0x1ec   : > { %v816_v10 = vsel %vm1456_vm6, %v813_v2, %v810_v1  ;;  %v776_v11 = vmul.f32 0.6931472, %v1158_v49 }
 0x1ed   : > { %v692_v58 = vsel %vm690_vm0, %v689_v4, 0.0  ;;  %v825_v12 = vsel %vm1460_vm7, %v822_v6, %v819_v5  ;;  %v826_v54 = vadd.f32 %v816_v10, %v798_v3 }
 0x1ee   : > { %v693_v13 = vadd.f32 %v692_v58, %v691_v9  ;;  %v827_v53 = vadd.f32 %v825_v12, %v799_v8  ;;  %v782_v14 = vsel %vm781_vm8, %v779_v7, %v776_v11 }
 0x1ef   : > { %v828_v15 = vsel %vm690_vm0, %v826_v54, 0.0  ;;  %v784_v16 = vadd.f32 %v782_v14, %v1410_v59 }
 0x1f0   : > { %694 = vadd.xlane.f32.xlu0 %v693_v13  ;;  %v829_v17 = vsel %vm690_vm0, %v827_v53, 0.0 }
 0x1f1   : > { %v830_v18 = vadd.f32 %v829_v17, %v828_v15  ;;  %v786_v3 = vsel %vm690_vm0, %v784_v16, 0.0 }
 0x1f2   : > { %v787_v19 = vadd.f32 %v786_v3, %v785_v24 }
 0x1f3   : > { %831 = vadd.xlane.f32.xlu1 %v830_v18 }
 0x1f4   : > { %788 = vadd.xlane.f32.xlu0 %v787_v19 }
 0x278   : > { %v738_v50 = vpop.xlane.xlu1 %737 }
 0x279   : > { %v739_v59 = vrot.slane %v738_v50, 4 }
 0x27b   : > { %v740_v8 = vadd.f32 %v739_v59, %v738_v50 }
 0x27d   : > { %v741_v20 = vrot.slane %v740_v8, 2  ;;  %v695_v21 = vpop.xlane.xlu0 %694 }
 0x27e   : > { %v696_v22 = vrot.slane %v695_v21, 4 }
 0x27f   : > { %v742_v29 = vadd.f32 %v741_v20, %v740_v8 }
 0x280   : > { %v697_v23 = vadd.f32 %v696_v22, %v695_v21  ;;  %v832_v25 = vpop.xlane.xlu1 %831 }
 0x281   : > { %v833_v26 = vrot.slane %v832_v25, 4  ;;  %v789_v28 = vpop.xlane.xlu0 %788  ;;  %v743_v36 = vrot.slane %v742_v29, 1 }
 0x282   : > { %v698_v30 = vrot.slane %v697_v23, 2  ;;  %v790_v31 = vrot.slane %v789_v28, 4 }
 0x283   : > { %v834_v32 = vadd.f32 %v833_v26, %v832_v25  ;;  %v744_v43 = vadd.f32 %v743_v36, %v742_v29 }
 0x284   : > { %v791_v33 = vadd.f32 %v790_v31, %v789_v28  ;;  %v699_v34 = vadd.f32 %v698_v30, %v697_v23 }
 0x285   : > { %v835_v35 = vrot.slane %v834_v32, 2 }
 0x286   : > { %v792_v37 = vrot.slane %v791_v33, 2  ;;  %v700_v38 = vrot.slane %v699_v34, 1 }
 0x287   : > { %v836_v40 = vadd.f32 %v835_v35, %v834_v32 }
 0x288   : > { %v793_v41 = vadd.f32 %v792_v37, %v791_v33  ;;  %v701_v42 = vadd.f32 %v700_v38, %v699_v34 }
 0x289   : > { %v837_v44 = vrot.slane %v836_v40, 1 }
 0x28a   : > { %1027 = vpush %v701_v42  ;;  %v794_v45 = vrot.slane %v793_v41, 1 }
 0x28b   : > { %1029 = vpush %v744_v43  ;;  %v838_v46 = vadd.f32 %v837_v44, %v836_v40 }
 0x28c   : > { %v795_v47 = vadd.f32 %v794_v45, %v793_v41 }
 0x28e   : > { %1031 = vpush %v795_v47 }
 0x28f   : > { %1033 = vpush %v838_v46 }
 0x2bb   : > { %s1028_s7 = spop %1027 }
 0x2bc   : > { %v703_v55 = vstv %s1028_s7  ;;  %s1030_s8 = spop %1029 }
 0x2bd   : > { %v746_v51 = vstv %s1030_s8 }
 0x2be   : > { %v747_v56 = vadd.f32 %v746_v51, %v703_v55 }
 0x2bf   : > { %s1032_s13 = spop %1031 }
 0x2c0   : > { %v748_v60 = vmul.f32 0.03125, %v747_v56  ;;  %v797_v52 = vstv %s1032_s13  ;;  %s1034_s14 = spop %1033 }
 0x2c1   : > { %v840_v61 = vstv %s1034_s14 }
 0x2c2   : > { %v749_v39 = vadd.f32 %v748_v60, %v657_v57  ;;  %v841_v62 = vadd.f32 %v840_v61, %v797_v52 }
 0x2c4   : > { %751 = vst.msk [vmem:[%s1490_s21] sm:$0x1] %vm395_vm9, %v749_v39  ;;  %v842_v1 = vmul.f32 0.03125, %v841_v62 }
 0x2c6   : > { %v843_v2 = vadd.f32 %v842_v1, %v752_v0 }
 0x2c8   : > { %844 = vst.msk [vmem:[%s1498_s12] sm:$0x1] %vm395_vm9, %v843_v2 }
 0x2c9 PF: > { %s18_s25 = sadd.s32 1, %s1216_s25   ;;  %s1545_s21 = smov %s1204_s22 }
 0x2ca   : > { %p15_p7 = scmp.ge.s32.totalorder %s18_s25, 5   ;;  %s1546_s22 = smov %s1306_s9 }
 0x2cb   : > { %s1547_s23 = smov %s1212_s24  ;;  %s1548_s24 = smov %s1550_s27 }
 0x2cc   :  { %17 = sbr.rel (!%p15_p7) target bundleno = 3 (0x3), region = 143 }
 0x2d3   :  { %874 = vsyncpa [#allocation4], 1 }
 0x2d4   :  { %876 = vsyncpa [#allocation4 + $0x1], 1 }

</bundles_post_ra>
